<compile_context>
chip_gen: v7x
topology: tpu7x:2x2x1
jax: 0.10.0
libtpu: 0.0.40
codegen_flags: <defaults>
</compile_context>

<pallas_src>
import jax
import jax.numpy as jnp
from jax.experimental import pallas as pl
from jax.experimental.pallas import tpu as pltpu


def _automaton_kernel(x_ref, pt_ref, start_ref, out_ref):
    # x_ref:     (L, S)     SMEM  -- per-step symbol weights (scalar reads)
    # pt_ref:    (S, T, T)  VMEM  -- per-symbol transposed transition matrices
    # start_ref: (1, T)     VMEM  -- start state as a lane-major row
    # out_ref:   (1, T)     VMEM  -- final state row (classes sliced in wrapper)
    L = x_ref.shape[0]
    S = pt_ref.shape[0]

    def build_wt(t):
        # Wt[m, n] = sum_s x[t, s] * Pt[s, m, n]  (== weighted_P.T for step t)
        w = x_ref[t, 0] * pt_ref[0]
        for s in range(1, S):  # static unroll, S is small
            w = w + x_ref[t, s] * pt_ref[s]
        return w

    if L == 0:
        out_ref[...] = start_ref[...]
        return

    # Level 1 of the tree: build adjacent per-step matrices and immediately
    # combine them, so the VPU build of pair j+1 overlaps the MXU matmul of
    # pair j (everything is statically unrolled -> full scheduler visibility).
    mats = []
    for j in range(L // 2):
        a = build_wt(2 * j)
        b = build_wt(2 * j + 1)
        mats.append(jnp.dot(a, b, preferred_element_type=jnp.float32))
    if L % 2:
        mats.append(build_wt(L - 1))

    # Remaining tree levels: pairwise products, time order preserved
    # (matrix product is associative; only FP reassociation vs. serial loop).
    while len(mats) > 1:
        nxt = []
        for i in range(0, len(mats) - 1, 2):
            nxt.append(jnp.dot(mats[i], mats[i + 1],
                               preferred_element_type=jnp.float32))
        if len(mats) % 2:
            nxt.append(mats[-1])
        mats = nxt

    # Apply the start state once: (1, T) @ (T, T) on the MXU.
    out_ref[...] = jnp.dot(start_ref[...], mats[0],
                           preferred_element_type=jnp.float32)


def neural_automaton_forward(x, total_P, start_state, num_states):
    """Pallas implementation of NeuralAutomaton.forward (single sequence)."""
    S, T, _ = total_P.shape
    # Glue (layout only): pre-transpose each per-symbol transition matrix so
    # the in-kernel recurrence is a clean row-vector @ matrix product.
    pt = jnp.transpose(total_P, (0, 2, 1)).astype(jnp.float32)  # Pt[s,m,n]=P[s,n,m]
    start_row = start_state.reshape(1, T).astype(jnp.float32)
    x = x.astype(jnp.float32)

    out = pl.pallas_call(
        _automaton_kernel,
        out_shape=jax.ShapeDtypeStruct((1, T), jnp.float32),
        in_specs=[
            pl.BlockSpec(memory_space=pltpu.MemorySpace.SMEM),   # x (scalar reads)
            pl.BlockSpec(memory_space=pltpu.MemorySpace.VMEM),   # Pt
            pl.BlockSpec(memory_space=pltpu.MemorySpace.VMEM),   # start state
        ],
        out_specs=pl.BlockSpec(memory_space=pltpu.MemorySpace.VMEM),
    )(x, pt, start_row)
    # Full state written lane-dense; take the class slice here.
    return out[0, num_states:]                                   # (num_classes,)


def init_params(key, num_states, num_symbols, num_classes):
    """Deterministic parameter init mirroring NeuralAutomaton.__init__."""
    T = num_states + num_classes
    k1, k2 = jax.random.split(key)
    p_non_accepting = jax.nn.softmax(
        jax.random.normal(k1, (num_symbols, num_states, num_states)), axis=2)
    p_to_accepting = jax.nn.softmax(
        jax.random.normal(k2, (num_symbols, num_states, num_classes)), axis=2)
    top = jnp.concatenate([p_non_accepting, p_to_accepting], axis=2)
    bottom = jnp.zeros((num_symbols, num_classes, T), jnp.float32)
    total_P = jnp.concatenate([top, bottom], axis=1).astype(jnp.float32)
    start_state = jnp.zeros((T,), jnp.float32).at[0].set(1.0)
    return total_P, start_state


def ref_forward(x, total_P, start_state, num_states):
    """Pure-JAX reference identical to the PyTorch forward (serial loop)."""
    state = start_state
    for t in range(x.shape[0]):
        weighted_P = jnp.einsum('s,snm->nm', x[t], total_P)
        state = weighted_P @ state
    return state[num_states:]


if __name__ == "__main__":
    num_states, num_symbols, num_classes = 24, 8, 8
    seq_len = 8

    key = jax.random.PRNGKey(0)
    kp, kx = jax.random.split(key)
    total_P, start_state = init_params(kp, num_states, num_symbols, num_classes)
    # Symbol distribution per timestep (same role as x[t, :] in the module).
    x = jax.nn.softmax(
        jax.random.normal(kx, (seq_len, num_symbols)), axis=-1).astype(jnp.float32)

    out = neural_automaton_forward(x, total_P, start_state, num_states)
    out = jax.block_until_ready(out)

    ref = ref_forward(x, total_P, start_state, num_states)
    assert out.shape == (num_classes,), out.shape
    assert jnp.allclose(out, ref, rtol=1e-4, atol=1e-5), (out, ref)
    print("KERNEL_OK")
</pallas_src>

<mosaic_0001>
module attributes {stable_mosaic.version = 11 : i64} {
  func.func @_automaton_kernel(%arg0: memref<8x8xf32, #tpu.memory_space<smem>>, %arg1: memref<8x32x32xf32, #tpu.memory_space<vmem>>, %arg2: memref<1x32xf32, #tpu.memory_space<vmem>>, %arg3: memref<1x32xf32, #tpu.memory_space<vmem>>) attributes {dimension_semantics = [], scalar_prefetch = 0 : i64, scratch_operands = 0 : i64, tpu.core_type = #tpu.core_type<tc>} {
    %c0 = arith.constant 0 : index
    %c0_0 = arith.constant 0 : index
    %0 = memref.load %arg0[%c0, %c0_0] : memref<8x8xf32, #tpu.memory_space<smem>>
    %c0_1 = arith.constant 0 : index
    %c0_2 = arith.constant 0 : index
    %c0_3 = arith.constant 0 : index
    %1 = vector.load %arg1[%c0_1, %c0_2, %c0_3] : memref<8x32x32xf32, #tpu.memory_space<vmem>>, vector<1x32x32xf32>
    %2 = vector.shape_cast %1 : vector<1x32x32xf32> to vector<32x32xf32>
    %3 = vector.broadcast %0 : f32 to vector<32x32xf32>
    %4 = arith.mulf %3, %2 : vector<32x32xf32>
    %c0_4 = arith.constant 0 : index
    %c1 = arith.constant 1 : index
    %5 = memref.load %arg0[%c0_4, %c1] : memref<8x8xf32, #tpu.memory_space<smem>>
    %c1_5 = arith.constant 1 : index
    %c0_6 = arith.constant 0 : index
    %c0_7 = arith.constant 0 : index
    %6 = vector.load %arg1[%c1_5, %c0_6, %c0_7] : memref<8x32x32xf32, #tpu.memory_space<vmem>>, vector<1x32x32xf32>
    %7 = vector.shape_cast %6 : vector<1x32x32xf32> to vector<32x32xf32>
    %8 = vector.broadcast %5 : f32 to vector<32x32xf32>
    %9 = arith.mulf %8, %7 : vector<32x32xf32>
    %10 = arith.addf %4, %9 : vector<32x32xf32>
    %c0_8 = arith.constant 0 : index
    %c2 = arith.constant 2 : index
    %11 = memref.load %arg0[%c0_8, %c2] : memref<8x8xf32, #tpu.memory_space<smem>>
    %c2_9 = arith.constant 2 : index
    %c0_10 = arith.constant 0 : index
    %c0_11 = arith.constant 0 : index
    %12 = vector.load %arg1[%c2_9, %c0_10, %c0_11] : memref<8x32x32xf32, #tpu.memory_space<vmem>>, vector<1x32x32xf32>
    %13 = vector.shape_cast %12 : vector<1x32x32xf32> to vector<32x32xf32>
    %14 = vector.broadcast %11 : f32 to vector<32x32xf32>
    %15 = arith.mulf %14, %13 : vector<32x32xf32>
    %16 = arith.addf %10, %15 : vector<32x32xf32>
    %c0_12 = arith.constant 0 : index
    %c3 = arith.constant 3 : index
    %17 = memref.load %arg0[%c0_12, %c3] : memref<8x8xf32, #tpu.memory_space<smem>>
    %c3_13 = arith.constant 3 : index
    %c0_14 = arith.constant 0 : index
    %c0_15 = arith.constant 0 : index
    %18 = vector.load %arg1[%c3_13, %c0_14, %c0_15] : memref<8x32x32xf32, #tpu.memory_space<vmem>>, vector<1x32x32xf32>
    %19 = vector.shape_cast %18 : vector<1x32x32xf32> to vector<32x32xf32>
    %20 = vector.broadcast %17 : f32 to vector<32x32xf32>
    %21 = arith.mulf %20, %19 : vector<32x32xf32>
    %22 = arith.addf %16, %21 : vector<32x32xf32>
    %c0_16 = arith.constant 0 : index
    %c4 = arith.constant 4 : index
    %23 = memref.load %arg0[%c0_16, %c4] : memref<8x8xf32, #tpu.memory_space<smem>>
    %c4_17 = arith.constant 4 : index
    %c0_18 = arith.constant 0 : index
    %c0_19 = arith.constant 0 : index
    %24 = vector.load %arg1[%c4_17, %c0_18, %c0_19] : memref<8x32x32xf32, #tpu.memory_space<vmem>>, vector<1x32x32xf32>
    %25 = vector.shape_cast %24 : vector<1x32x32xf32> to vector<32x32xf32>
    %26 = vector.broadcast %23 : f32 to vector<32x32xf32>
    %27 = arith.mulf %26, %25 : vector<32x32xf32>
    %28 = arith.addf %22, %27 : vector<32x32xf32>
    %c0_20 = arith.constant 0 : index
    %c5 = arith.constant 5 : index
    %29 = memref.load %arg0[%c0_20, %c5] : memref<8x8xf32, #tpu.memory_space<smem>>
    %c5_21 = arith.constant 5 : index
    %c0_22 = arith.constant 0 : index
    %c0_23 = arith.constant 0 : index
    %30 = vector.load %arg1[%c5_21, %c0_22, %c0_23] : memref<8x32x32xf32, #tpu.memory_space<vmem>>, vector<1x32x32xf32>
    %31 = vector.shape_cast %30 : vector<1x32x32xf32> to vector<32x32xf32>
    %32 = vector.broadcast %29 : f32 to vector<32x32xf32>
    %33 = arith.mulf %32, %31 : vector<32x32xf32>
    %34 = arith.addf %28, %33 : vector<32x32xf32>
    %c0_24 = arith.constant 0 : index
    %c6 = arith.constant 6 : index
    %35 = memref.load %arg0[%c0_24, %c6] : memref<8x8xf32, #tpu.memory_space<smem>>
    %c6_25 = arith.constant 6 : index
    %c0_26 = arith.constant 0 : index
    %c0_27 = arith.constant 0 : index
    %36 = vector.load %arg1[%c6_25, %c0_26, %c0_27] : memref<8x32x32xf32, #tpu.memory_space<vmem>>, vector<1x32x32xf32>
    %37 = vector.shape_cast %36 : vector<1x32x32xf32> to vector<32x32xf32>
    %38 = vector.broadcast %35 : f32 to vector<32x32xf32>
    %39 = arith.mulf %38, %37 : vector<32x32xf32>
    %40 = arith.addf %34, %39 : vector<32x32xf32>
    %c0_28 = arith.constant 0 : index
    %c7 = arith.constant 7 : index
    %41 = memref.load %arg0[%c0_28, %c7] : memref<8x8xf32, #tpu.memory_space<smem>>
    %c7_29 = arith.constant 7 : index
    %c0_30 = arith.constant 0 : index
    %c0_31 = arith.constant 0 : index
    %42 = vector.load %arg1[%c7_29, %c0_30, %c0_31] : memref<8x32x32xf32, #tpu.memory_space<vmem>>, vector<1x32x32xf32>
    %43 = vector.shape_cast %42 : vector<1x32x32xf32> to vector<32x32xf32>
    %44 = vector.broadcast %41 : f32 to vector<32x32xf32>
    %45 = arith.mulf %44, %43 : vector<32x32xf32>
    %46 = arith.addf %40, %45 : vector<32x32xf32>
    %c1_32 = arith.constant 1 : index
    %c0_33 = arith.constant 0 : index
    %47 = memref.load %arg0[%c1_32, %c0_33] : memref<8x8xf32, #tpu.memory_space<smem>>
    %c0_34 = arith.constant 0 : index
    %c0_35 = arith.constant 0 : index
    %c0_36 = arith.constant 0 : index
    %48 = vector.load %arg1[%c0_34, %c0_35, %c0_36] : memref<8x32x32xf32, #tpu.memory_space<vmem>>, vector<1x32x32xf32>
    %49 = vector.shape_cast %48 : vector<1x32x32xf32> to vector<32x32xf32>
    %50 = vector.broadcast %47 : f32 to vector<32x32xf32>
    %51 = arith.mulf %50, %49 : vector<32x32xf32>
    %c1_37 = arith.constant 1 : index
    %c1_38 = arith.constant 1 : index
    %52 = memref.load %arg0[%c1_37, %c1_38] : memref<8x8xf32, #tpu.memory_space<smem>>
    %c1_39 = arith.constant 1 : index
    %c0_40 = arith.constant 0 : index
    %c0_41 = arith.constant 0 : index
    %53 = vector.load %arg1[%c1_39, %c0_40, %c0_41] : memref<8x32x32xf32, #tpu.memory_space<vmem>>, vector<1x32x32xf32>
    %54 = vector.shape_cast %53 : vector<1x32x32xf32> to vector<32x32xf32>
    %55 = vector.broadcast %52 : f32 to vector<32x32xf32>
    %56 = arith.mulf %55, %54 : vector<32x32xf32>
    %57 = arith.addf %51, %56 : vector<32x32xf32>
    %c1_42 = arith.constant 1 : index
    %c2_43 = arith.constant 2 : index
    %58 = memref.load %arg0[%c1_42, %c2_43] : memref<8x8xf32, #tpu.memory_space<smem>>
    %c2_44 = arith.constant 2 : index
    %c0_45 = arith.constant 0 : index
    %c0_46 = arith.constant 0 : index
    %59 = vector.load %arg1[%c2_44, %c0_45, %c0_46] : memref<8x32x32xf32, #tpu.memory_space<vmem>>, vector<1x32x32xf32>
    %60 = vector.shape_cast %59 : vector<1x32x32xf32> to vector<32x32xf32>
    %61 = vector.broadcast %58 : f32 to vector<32x32xf32>
    %62 = arith.mulf %61, %60 : vector<32x32xf32>
    %63 = arith.addf %57, %62 : vector<32x32xf32>
    %c1_47 = arith.constant 1 : index
    %c3_48 = arith.constant 3 : index
    %64 = memref.load %arg0[%c1_47, %c3_48] : memref<8x8xf32, #tpu.memory_space<smem>>
    %c3_49 = arith.constant 3 : index
    %c0_50 = arith.constant 0 : index
    %c0_51 = arith.constant 0 : index
    %65 = vector.load %arg1[%c3_49, %c0_50, %c0_51] : memref<8x32x32xf32, #tpu.memory_space<vmem>>, vector<1x32x32xf32>
    %66 = vector.shape_cast %65 : vector<1x32x32xf32> to vector<32x32xf32>
    %67 = vector.broadcast %64 : f32 to vector<32x32xf32>
    %68 = arith.mulf %67, %66 : vector<32x32xf32>
    %69 = arith.addf %63, %68 : vector<32x32xf32>
    %c1_52 = arith.constant 1 : index
    %c4_53 = arith.constant 4 : index
    %70 = memref.load %arg0[%c1_52, %c4_53] : memref<8x8xf32, #tpu.memory_space<smem>>
    %c4_54 = arith.constant 4 : index
    %c0_55 = arith.constant 0 : index
    %c0_56 = arith.constant 0 : index
    %71 = vector.load %arg1[%c4_54, %c0_55, %c0_56] : memref<8x32x32xf32, #tpu.memory_space<vmem>>, vector<1x32x32xf32>
    %72 = vector.shape_cast %71 : vector<1x32x32xf32> to vector<32x32xf32>
    %73 = vector.broadcast %70 : f32 to vector<32x32xf32>
    %74 = arith.mulf %73, %72 : vector<32x32xf32>
    %75 = arith.addf %69, %74 : vector<32x32xf32>
    %c1_57 = arith.constant 1 : index
    %c5_58 = arith.constant 5 : index
    %76 = memref.load %arg0[%c1_57, %c5_58] : memref<8x8xf32, #tpu.memory_space<smem>>
    %c5_59 = arith.constant 5 : index
    %c0_60 = arith.constant 0 : index
    %c0_61 = arith.constant 0 : index
    %77 = vector.load %arg1[%c5_59, %c0_60, %c0_61] : memref<8x32x32xf32, #tpu.memory_space<vmem>>, vector<1x32x32xf32>
    %78 = vector.shape_cast %77 : vector<1x32x32xf32> to vector<32x32xf32>
    %79 = vector.broadcast %76 : f32 to vector<32x32xf32>
    %80 = arith.mulf %79, %78 : vector<32x32xf32>
    %81 = arith.addf %75, %80 : vector<32x32xf32>
    %c1_62 = arith.constant 1 : index
    %c6_63 = arith.constant 6 : index
    %82 = memref.load %arg0[%c1_62, %c6_63] : memref<8x8xf32, #tpu.memory_space<smem>>
    %c6_64 = arith.constant 6 : index
    %c0_65 = arith.constant 0 : index
    %c0_66 = arith.constant 0 : index
    %83 = vector.load %arg1[%c6_64, %c0_65, %c0_66] : memref<8x32x32xf32, #tpu.memory_space<vmem>>, vector<1x32x32xf32>
    %84 = vector.shape_cast %83 : vector<1x32x32xf32> to vector<32x32xf32>
    %85 = vector.broadcast %82 : f32 to vector<32x32xf32>
    %86 = arith.mulf %85, %84 : vector<32x32xf32>
    %87 = arith.addf %81, %86 : vector<32x32xf32>
    %c1_67 = arith.constant 1 : index
    %c7_68 = arith.constant 7 : index
    %88 = memref.load %arg0[%c1_67, %c7_68] : memref<8x8xf32, #tpu.memory_space<smem>>
    %c7_69 = arith.constant 7 : index
    %c0_70 = arith.constant 0 : index
    %c0_71 = arith.constant 0 : index
    %89 = vector.load %arg1[%c7_69, %c0_70, %c0_71] : memref<8x32x32xf32, #tpu.memory_space<vmem>>, vector<1x32x32xf32>
    %90 = vector.shape_cast %89 : vector<1x32x32xf32> to vector<32x32xf32>
    %91 = vector.broadcast %88 : f32 to vector<32x32xf32>
    %92 = arith.mulf %91, %90 : vector<32x32xf32>
    %93 = arith.addf %87, %92 : vector<32x32xf32>
    %cst = arith.constant dense<0.000000e+00> : vector<32x32xf32>
    %94 = tpu.matmul %46, %93, %cst {dimension_numbers = #tpu.dot_dimension_numbers<[1], [0], [0], [1], [0, 0, 1, 1], [], []>} : vector<32x32xf32>, vector<32x32xf32>, vector<32x32xf32> -> vector<32x32xf32>
    %c2_72 = arith.constant 2 : index
    %c0_73 = arith.constant 0 : index
    %95 = memref.load %arg0[%c2_72, %c0_73] : memref<8x8xf32, #tpu.memory_space<smem>>
    %c0_74 = arith.constant 0 : index
    %c0_75 = arith.constant 0 : index
    %c0_76 = arith.constant 0 : index
    %96 = vector.load %arg1[%c0_74, %c0_75, %c0_76] : memref<8x32x32xf32, #tpu.memory_space<vmem>>, vector<1x32x32xf32>
    %97 = vector.shape_cast %96 : vector<1x32x32xf32> to vector<32x32xf32>
    %98 = vector.broadcast %95 : f32 to vector<32x32xf32>
    %99 = arith.mulf %98, %97 : vector<32x32xf32>
    %c2_77 = arith.constant 2 : index
    %c1_78 = arith.constant 1 : index
    %100 = memref.load %arg0[%c2_77, %c1_78] : memref<8x8xf32, #tpu.memory_space<smem>>
    %c1_79 = arith.constant 1 : index
    %c0_80 = arith.constant 0 : index
    %c0_81 = arith.constant 0 : index
    %101 = vector.load %arg1[%c1_79, %c0_80, %c0_81] : memref<8x32x32xf32, #tpu.memory_space<vmem>>, vector<1x32x32xf32>
    %102 = vector.shape_cast %101 : vector<1x32x32xf32> to vector<32x32xf32>
    %103 = vector.broadcast %100 : f32 to vector<32x32xf32>
    %104 = arith.mulf %103, %102 : vector<32x32xf32>
    %105 = arith.addf %99, %104 : vector<32x32xf32>
    %c2_82 = arith.constant 2 : index
    %c2_83 = arith.constant 2 : index
    %106 = memref.load %arg0[%c2_82, %c2_83] : memref<8x8xf32, #tpu.memory_space<smem>>
    %c2_84 = arith.constant 2 : index
    %c0_85 = arith.constant 0 : index
    %c0_86 = arith.constant 0 : index
    %107 = vector.load %arg1[%c2_84, %c0_85, %c0_86] : memref<8x32x32xf32, #tpu.memory_space<vmem>>, vector<1x32x32xf32>
    %108 = vector.shape_cast %107 : vector<1x32x32xf32> to vector<32x32xf32>
    %109 = vector.broadcast %106 : f32 to vector<32x32xf32>
    %110 = arith.mulf %109, %108 : vector<32x32xf32>
    %111 = arith.addf %105, %110 : vector<32x32xf32>
    %c2_87 = arith.constant 2 : index
    %c3_88 = arith.constant 3 : index
    %112 = memref.load %arg0[%c2_87, %c3_88] : memref<8x8xf32, #tpu.memory_space<smem>>
    %c3_89 = arith.constant 3 : index
    %c0_90 = arith.constant 0 : index
    %c0_91 = arith.constant 0 : index
    %113 = vector.load %arg1[%c3_89, %c0_90, %c0_91] : memref<8x32x32xf32, #tpu.memory_space<vmem>>, vector<1x32x32xf32>
    %114 = vector.shape_cast %113 : vector<1x32x32xf32> to vector<32x32xf32>
    %115 = vector.broadcast %112 : f32 to vector<32x32xf32>
    %116 = arith.mulf %115, %114 : vector<32x32xf32>
    %117 = arith.addf %111, %116 : vector<32x32xf32>
    %c2_92 = arith.constant 2 : index
    %c4_93 = arith.constant 4 : index
    %118 = memref.load %arg0[%c2_92, %c4_93] : memref<8x8xf32, #tpu.memory_space<smem>>
    %c4_94 = arith.constant 4 : index
    %c0_95 = arith.constant 0 : index
    %c0_96 = arith.constant 0 : index
    %119 = vector.load %arg1[%c4_94, %c0_95, %c0_96] : memref<8x32x32xf32, #tpu.memory_space<vmem>>, vector<1x32x32xf32>
    %120 = vector.shape_cast %119 : vector<1x32x32xf32> to vector<32x32xf32>
    %121 = vector.broadcast %118 : f32 to vector<32x32xf32>
    %122 = arith.mulf %121, %120 : vector<32x32xf32>
    %123 = arith.addf %117, %122 : vector<32x32xf32>
    %c2_97 = arith.constant 2 : index
    %c5_98 = arith.constant 5 : index
    %124 = memref.load %arg0[%c2_97, %c5_98] : memref<8x8xf32, #tpu.memory_space<smem>>
    %c5_99 = arith.constant 5 : index
    %c0_100 = arith.constant 0 : index
    %c0_101 = arith.constant 0 : index
    %125 = vector.load %arg1[%c5_99, %c0_100, %c0_101] : memref<8x32x32xf32, #tpu.memory_space<vmem>>, vector<1x32x32xf32>
    %126 = vector.shape_cast %125 : vector<1x32x32xf32> to vector<32x32xf32>
    %127 = vector.broadcast %124 : f32 to vector<32x32xf32>
    %128 = arith.mulf %127, %126 : vector<32x32xf32>
    %129 = arith.addf %123, %128 : vector<32x32xf32>
    %c2_102 = arith.constant 2 : index
    %c6_103 = arith.constant 6 : index
    %130 = memref.load %arg0[%c2_102, %c6_103] : memref<8x8xf32, #tpu.memory_space<smem>>
    %c6_104 = arith.constant 6 : index
    %c0_105 = arith.constant 0 : index
    %c0_106 = arith.constant 0 : index
    %131 = vector.load %arg1[%c6_104, %c0_105, %c0_106] : memref<8x32x32xf32, #tpu.memory_space<vmem>>, vector<1x32x32xf32>
    %132 = vector.shape_cast %131 : vector<1x32x32xf32> to vector<32x32xf32>
    %133 = vector.broadcast %130 : f32 to vector<32x32xf32>
    %134 = arith.mulf %133, %132 : vector<32x32xf32>
    %135 = arith.addf %129, %134 : vector<32x32xf32>
    %c2_107 = arith.constant 2 : index
    %c7_108 = arith.constant 7 : index
    %136 = memref.load %arg0[%c2_107, %c7_108] : memref<8x8xf32, #tpu.memory_space<smem>>
    %c7_109 = arith.constant 7 : index
    %c0_110 = arith.constant 0 : index
    %c0_111 = arith.constant 0 : index
    %137 = vector.load %arg1[%c7_109, %c0_110, %c0_111] : memref<8x32x32xf32, #tpu.memory_space<vmem>>, vector<1x32x32xf32>
    %138 = vector.shape_cast %137 : vector<1x32x32xf32> to vector<32x32xf32>
    %139 = vector.broadcast %136 : f32 to vector<32x32xf32>
    %140 = arith.mulf %139, %138 : vector<32x32xf32>
    %141 = arith.addf %135, %140 : vector<32x32xf32>
    %c3_112 = arith.constant 3 : index
    %c0_113 = arith.constant 0 : index
    %142 = memref.load %arg0[%c3_112, %c0_113] : memref<8x8xf32, #tpu.memory_space<smem>>
    %c0_114 = arith.constant 0 : index
    %c0_115 = arith.constant 0 : index
    %c0_116 = arith.constant 0 : index
    %143 = vector.load %arg1[%c0_114, %c0_115, %c0_116] : memref<8x32x32xf32, #tpu.memory_space<vmem>>, vector<1x32x32xf32>
    %144 = vector.shape_cast %143 : vector<1x32x32xf32> to vector<32x32xf32>
    %145 = vector.broadcast %142 : f32 to vector<32x32xf32>
    %146 = arith.mulf %145, %144 : vector<32x32xf32>
    %c3_117 = arith.constant 3 : index
    %c1_118 = arith.constant 1 : index
    %147 = memref.load %arg0[%c3_117, %c1_118] : memref<8x8xf32, #tpu.memory_space<smem>>
    %c1_119 = arith.constant 1 : index
    %c0_120 = arith.constant 0 : index
    %c0_121 = arith.constant 0 : index
    %148 = vector.load %arg1[%c1_119, %c0_120, %c0_121] : memref<8x32x32xf32, #tpu.memory_space<vmem>>, vector<1x32x32xf32>
    %149 = vector.shape_cast %148 : vector<1x32x32xf32> to vector<32x32xf32>
    %150 = vector.broadcast %147 : f32 to vector<32x32xf32>
    %151 = arith.mulf %150, %149 : vector<32x32xf32>
    %152 = arith.addf %146, %151 : vector<32x32xf32>
    %c3_122 = arith.constant 3 : index
    %c2_123 = arith.constant 2 : index
    %153 = memref.load %arg0[%c3_122, %c2_123] : memref<8x8xf32, #tpu.memory_space<smem>>
    %c2_124 = arith.constant 2 : index
    %c0_125 = arith.constant 0 : index
    %c0_126 = arith.constant 0 : index
    %154 = vector.load %arg1[%c2_124, %c0_125, %c0_126] : memref<8x32x32xf32, #tpu.memory_space<vmem>>, vector<1x32x32xf32>
    %155 = vector.shape_cast %154 : vector<1x32x32xf32> to vector<32x32xf32>
    %156 = vector.broadcast %153 : f32 to vector<32x32xf32>
    %157 = arith.mulf %156, %155 : vector<32x32xf32>
    %158 = arith.addf %152, %157 : vector<32x32xf32>
    %c3_127 = arith.constant 3 : index
    %c3_128 = arith.constant 3 : index
    %159 = memref.load %arg0[%c3_127, %c3_128] : memref<8x8xf32, #tpu.memory_space<smem>>
    %c3_129 = arith.constant 3 : index
    %c0_130 = arith.constant 0 : index
    %c0_131 = arith.constant 0 : index
    %160 = vector.load %arg1[%c3_129, %c0_130, %c0_131] : memref<8x32x32xf32, #tpu.memory_space<vmem>>, vector<1x32x32xf32>
    %161 = vector.shape_cast %160 : vector<1x32x32xf32> to vector<32x32xf32>
    %162 = vector.broadcast %159 : f32 to vector<32x32xf32>
    %163 = arith.mulf %162, %161 : vector<32x32xf32>
    %164 = arith.addf %158, %163 : vector<32x32xf32>
    %c3_132 = arith.constant 3 : index
    %c4_133 = arith.constant 4 : index
    %165 = memref.load %arg0[%c3_132, %c4_133] : memref<8x8xf32, #tpu.memory_space<smem>>
    %c4_134 = arith.constant 4 : index
    %c0_135 = arith.constant 0 : index
    %c0_136 = arith.constant 0 : index
    %166 = vector.load %arg1[%c4_134, %c0_135, %c0_136] : memref<8x32x32xf32, #tpu.memory_space<vmem>>, vector<1x32x32xf32>
    %167 = vector.shape_cast %166 : vector<1x32x32xf32> to vector<32x32xf32>
    %168 = vector.broadcast %165 : f32 to vector<32x32xf32>
    %169 = arith.mulf %168, %167 : vector<32x32xf32>
    %170 = arith.addf %164, %169 : vector<32x32xf32>
    %c3_137 = arith.constant 3 : index
    %c5_138 = arith.constant 5 : index
    %171 = memref.load %arg0[%c3_137, %c5_138] : memref<8x8xf32, #tpu.memory_space<smem>>
    %c5_139 = arith.constant 5 : index
    %c0_140 = arith.constant 0 : index
    %c0_141 = arith.constant 0 : index
    %172 = vector.load %arg1[%c5_139, %c0_140, %c0_141] : memref<8x32x32xf32, #tpu.memory_space<vmem>>, vector<1x32x32xf32>
    %173 = vector.shape_cast %172 : vector<1x32x32xf32> to vector<32x32xf32>
    %174 = vector.broadcast %171 : f32 to vector<32x32xf32>
    %175 = arith.mulf %174, %173 : vector<32x32xf32>
    %176 = arith.addf %170, %175 : vector<32x32xf32>
    %c3_142 = arith.constant 3 : index
    %c6_143 = arith.constant 6 : index
    %177 = memref.load %arg0[%c3_142, %c6_143] : memref<8x8xf32, #tpu.memory_space<smem>>
    %c6_144 = arith.constant 6 : index
    %c0_145 = arith.constant 0 : index
    %c0_146 = arith.constant 0 : index
    %178 = vector.load %arg1[%c6_144, %c0_145, %c0_146] : memref<8x32x32xf32, #tpu.memory_space<vmem>>, vector<1x32x32xf32>
    %179 = vector.shape_cast %178 : vector<1x32x32xf32> to vector<32x32xf32>
    %180 = vector.broadcast %177 : f32 to vector<32x32xf32>
    %181 = arith.mulf %180, %179 : vector<32x32xf32>
    %182 = arith.addf %176, %181 : vector<32x32xf32>
    %c3_147 = arith.constant 3 : index
    %c7_148 = arith.constant 7 : index
    %183 = memref.load %arg0[%c3_147, %c7_148] : memref<8x8xf32, #tpu.memory_space<smem>>
    %c7_149 = arith.constant 7 : index
    %c0_150 = arith.constant 0 : index
    %c0_151 = arith.constant 0 : index
    %184 = vector.load %arg1[%c7_149, %c0_150, %c0_151] : memref<8x32x32xf32, #tpu.memory_space<vmem>>, vector<1x32x32xf32>
    %185 = vector.shape_cast %184 : vector<1x32x32xf32> to vector<32x32xf32>
    %186 = vector.broadcast %183 : f32 to vector<32x32xf32>
    %187 = arith.mulf %186, %185 : vector<32x32xf32>
    %188 = arith.addf %182, %187 : vector<32x32xf32>
    %cst_152 = arith.constant dense<0.000000e+00> : vector<32x32xf32>
    %189 = tpu.matmul %141, %188, %cst_152 {dimension_numbers = #tpu.dot_dimension_numbers<[1], [0], [0], [1], [0, 0, 1, 1], [], []>} : vector<32x32xf32>, vector<32x32xf32>, vector<32x32xf32> -> vector<32x32xf32>
    %c4_153 = arith.constant 4 : index
    %c0_154 = arith.constant 0 : index
    %190 = memref.load %arg0[%c4_153, %c0_154] : memref<8x8xf32, #tpu.memory_space<smem>>
    %c0_155 = arith.constant 0 : index
    %c0_156 = arith.constant 0 : index
    %c0_157 = arith.constant 0 : index
    %191 = vector.load %arg1[%c0_155, %c0_156, %c0_157] : memref<8x32x32xf32, #tpu.memory_space<vmem>>, vector<1x32x32xf32>
    %192 = vector.shape_cast %191 : vector<1x32x32xf32> to vector<32x32xf32>
    %193 = vector.broadcast %190 : f32 to vector<32x32xf32>
    %194 = arith.mulf %193, %192 : vector<32x32xf32>
    %c4_158 = arith.constant 4 : index
    %c1_159 = arith.constant 1 : index
    %195 = memref.load %arg0[%c4_158, %c1_159] : memref<8x8xf32, #tpu.memory_space<smem>>
    %c1_160 = arith.constant 1 : index
    %c0_161 = arith.constant 0 : index
    %c0_162 = arith.constant 0 : index
    %196 = vector.load %arg1[%c1_160, %c0_161, %c0_162] : memref<8x32x32xf32, #tpu.memory_space<vmem>>, vector<1x32x32xf32>
    %197 = vector.shape_cast %196 : vector<1x32x32xf32> to vector<32x32xf32>
    %198 = vector.broadcast %195 : f32 to vector<32x32xf32>
    %199 = arith.mulf %198, %197 : vector<32x32xf32>
    %200 = arith.addf %194, %199 : vector<32x32xf32>
    %c4_163 = arith.constant 4 : index
    %c2_164 = arith.constant 2 : index
    %201 = memref.load %arg0[%c4_163, %c2_164] : memref<8x8xf32, #tpu.memory_space<smem>>
    %c2_165 = arith.constant 2 : index
    %c0_166 = arith.constant 0 : index
    %c0_167 = arith.constant 0 : index
    %202 = vector.load %arg1[%c2_165, %c0_166, %c0_167] : memref<8x32x32xf32, #tpu.memory_space<vmem>>, vector<1x32x32xf32>
    %203 = vector.shape_cast %202 : vector<1x32x32xf32> to vector<32x32xf32>
    %204 = vector.broadcast %201 : f32 to vector<32x32xf32>
    %205 = arith.mulf %204, %203 : vector<32x32xf32>
    %206 = arith.addf %200, %205 : vector<32x32xf32>
    %c4_168 = arith.constant 4 : index
    %c3_169 = arith.constant 3 : index
    %207 = memref.load %arg0[%c4_168, %c3_169] : memref<8x8xf32, #tpu.memory_space<smem>>
    %c3_170 = arith.constant 3 : index
    %c0_171 = arith.constant 0 : index
    %c0_172 = arith.constant 0 : index
    %208 = vector.load %arg1[%c3_170, %c0_171, %c0_172] : memref<8x32x32xf32, #tpu.memory_space<vmem>>, vector<1x32x32xf32>
    %209 = vector.shape_cast %208 : vector<1x32x32xf32> to vector<32x32xf32>
    %210 = vector.broadcast %207 : f32 to vector<32x32xf32>
    %211 = arith.mulf %210, %209 : vector<32x32xf32>
    %212 = arith.addf %206, %211 : vector<32x32xf32>
    %c4_173 = arith.constant 4 : index
    %c4_174 = arith.constant 4 : index
    %213 = memref.load %arg0[%c4_173, %c4_174] : memref<8x8xf32, #tpu.memory_space<smem>>
    %c4_175 = arith.constant 4 : index
    %c0_176 = arith.constant 0 : index
    %c0_177 = arith.constant 0 : index
    %214 = vector.load %arg1[%c4_175, %c0_176, %c0_177] : memref<8x32x32xf32, #tpu.memory_space<vmem>>, vector<1x32x32xf32>
    %215 = vector.shape_cast %214 : vector<1x32x32xf32> to vector<32x32xf32>
    %216 = vector.broadcast %213 : f32 to vector<32x32xf32>
    %217 = arith.mulf %216, %215 : vector<32x32xf32>
    %218 = arith.addf %212, %217 : vector<32x32xf32>
    %c4_178 = arith.constant 4 : index
    %c5_179 = arith.constant 5 : index
    %219 = memref.load %arg0[%c4_178, %c5_179] : memref<8x8xf32, #tpu.memory_space<smem>>
    %c5_180 = arith.constant 5 : index
    %c0_181 = arith.constant 0 : index
    %c0_182 = arith.constant 0 : index
    %220 = vector.load %arg1[%c5_180, %c0_181, %c0_182] : memref<8x32x32xf32, #tpu.memory_space<vmem>>, vector<1x32x32xf32>
    %221 = vector.shape_cast %220 : vector<1x32x32xf32> to vector<32x32xf32>
    %222 = vector.broadcast %219 : f32 to vector<32x32xf32>
    %223 = arith.mulf %222, %221 : vector<32x32xf32>
    %224 = arith.addf %218, %223 : vector<32x32xf32>
    %c4_183 = arith.constant 4 : index
    %c6_184 = arith.constant 6 : index
    %225 = memref.load %arg0[%c4_183, %c6_184] : memref<8x8xf32, #tpu.memory_space<smem>>
    %c6_185 = arith.constant 6 : index
    %c0_186 = arith.constant 0 : index
    %c0_187 = arith.constant 0 : index
    %226 = vector.load %arg1[%c6_185, %c0_186, %c0_187] : memref<8x32x32xf32, #tpu.memory_space<vmem>>, vector<1x32x32xf32>
    %227 = vector.shape_cast %226 : vector<1x32x32xf32> to vector<32x32xf32>
    %228 = vector.broadcast %225 : f32 to vector<32x32xf32>
    %229 = arith.mulf %228, %227 : vector<32x32xf32>
    %230 = arith.addf %224, %229 : vector<32x32xf32>
    %c4_188 = arith.constant 4 : index
    %c7_189 = arith.constant 7 : index
    %231 = memref.load %arg0[%c4_188, %c7_189] : memref<8x8xf32, #tpu.memory_space<smem>>
    %c7_190 = arith.constant 7 : index
    %c0_191 = arith.constant 0 : index
    %c0_192 = arith.constant 0 : index
    %232 = vector.load %arg1[%c7_190, %c0_191, %c0_192] : memref<8x32x32xf32, #tpu.memory_space<vmem>>, vector<1x32x32xf32>
    %233 = vector.shape_cast %232 : vector<1x32x32xf32> to vector<32x32xf32>
    %234 = vector.broadcast %231 : f32 to vector<32x32xf32>
    %235 = arith.mulf %234, %233 : vector<32x32xf32>
    %236 = arith.addf %230, %235 : vector<32x32xf32>
    %c5_193 = arith.constant 5 : index
    %c0_194 = arith.constant 0 : index
    %237 = memref.load %arg0[%c5_193, %c0_194] : memref<8x8xf32, #tpu.memory_space<smem>>
    %c0_195 = arith.constant 0 : index
    %c0_196 = arith.constant 0 : index
    %c0_197 = arith.constant 0 : index
    %238 = vector.load %arg1[%c0_195, %c0_196, %c0_197] : memref<8x32x32xf32, #tpu.memory_space<vmem>>, vector<1x32x32xf32>
    %239 = vector.shape_cast %238 : vector<1x32x32xf32> to vector<32x32xf32>
    %240 = vector.broadcast %237 : f32 to vector<32x32xf32>
    %241 = arith.mulf %240, %239 : vector<32x32xf32>
    %c5_198 = arith.constant 5 : index
    %c1_199 = arith.constant 1 : index
    %242 = memref.load %arg0[%c5_198, %c1_199] : memref<8x8xf32, #tpu.memory_space<smem>>
    %c1_200 = arith.constant 1 : index
    %c0_201 = arith.constant 0 : index
    %c0_202 = arith.constant 0 : index
    %243 = vector.load %arg1[%c1_200, %c0_201, %c0_202] : memref<8x32x32xf32, #tpu.memory_space<vmem>>, vector<1x32x32xf32>
    %244 = vector.shape_cast %243 : vector<1x32x32xf32> to vector<32x32xf32>
    %245 = vector.broadcast %242 : f32 to vector<32x32xf32>
    %246 = arith.mulf %245, %244 : vector<32x32xf32>
    %247 = arith.addf %241, %246 : vector<32x32xf32>
    %c5_203 = arith.constant 5 : index
    %c2_204 = arith.constant 2 : index
    %248 = memref.load %arg0[%c5_203, %c2_204] : memref<8x8xf32, #tpu.memory_space<smem>>
    %c2_205 = arith.constant 2 : index
    %c0_206 = arith.constant 0 : index
    %c0_207 = arith.constant 0 : index
    %249 = vector.load %arg1[%c2_205, %c0_206, %c0_207] : memref<8x32x32xf32, #tpu.memory_space<vmem>>, vector<1x32x32xf32>
    %250 = vector.shape_cast %249 : vector<1x32x32xf32> to vector<32x32xf32>
    %251 = vector.broadcast %248 : f32 to vector<32x32xf32>
    %252 = arith.mulf %251, %250 : vector<32x32xf32>
    %253 = arith.addf %247, %252 : vector<32x32xf32>
    %c5_208 = arith.constant 5 : index
    %c3_209 = arith.constant 3 : index
    %254 = memref.load %arg0[%c5_208, %c3_209] : memref<8x8xf32, #tpu.memory_space<smem>>
    %c3_210 = arith.constant 3 : index
    %c0_211 = arith.constant 0 : index
    %c0_212 = arith.constant 0 : index
    %255 = vector.load %arg1[%c3_210, %c0_211, %c0_212] : memref<8x32x32xf32, #tpu.memory_space<vmem>>, vector<1x32x32xf32>
    %256 = vector.shape_cast %255 : vector<1x32x32xf32> to vector<32x32xf32>
    %257 = vector.broadcast %254 : f32 to vector<32x32xf32>
    %258 = arith.mulf %257, %256 : vector<32x32xf32>
    %259 = arith.addf %253, %258 : vector<32x32xf32>
    %c5_213 = arith.constant 5 : index
    %c4_214 = arith.constant 4 : index
    %260 = memref.load %arg0[%c5_213, %c4_214] : memref<8x8xf32, #tpu.memory_space<smem>>
    %c4_215 = arith.constant 4 : index
    %c0_216 = arith.constant 0 : index
    %c0_217 = arith.constant 0 : index
    %261 = vector.load %arg1[%c4_215, %c0_216, %c0_217] : memref<8x32x32xf32, #tpu.memory_space<vmem>>, vector<1x32x32xf32>
    %262 = vector.shape_cast %261 : vector<1x32x32xf32> to vector<32x32xf32>
    %263 = vector.broadcast %260 : f32 to vector<32x32xf32>
    %264 = arith.mulf %263, %262 : vector<32x32xf32>
    %265 = arith.addf %259, %264 : vector<32x32xf32>
    %c5_218 = arith.constant 5 : index
    %c5_219 = arith.constant 5 : index
    %266 = memref.load %arg0[%c5_218, %c5_219] : memref<8x8xf32, #tpu.memory_space<smem>>
    %c5_220 = arith.constant 5 : index
    %c0_221 = arith.constant 0 : index
    %c0_222 = arith.constant 0 : index
    %267 = vector.load %arg1[%c5_220, %c0_221, %c0_222] : memref<8x32x32xf32, #tpu.memory_space<vmem>>, vector<1x32x32xf32>
    %268 = vector.shape_cast %267 : vector<1x32x32xf32> to vector<32x32xf32>
    %269 = vector.broadcast %266 : f32 to vector<32x32xf32>
    %270 = arith.mulf %269, %268 : vector<32x32xf32>
    %271 = arith.addf %265, %270 : vector<32x32xf32>
    %c5_223 = arith.constant 5 : index
    %c6_224 = arith.constant 6 : index
    %272 = memref.load %arg0[%c5_223, %c6_224] : memref<8x8xf32, #tpu.memory_space<smem>>
    %c6_225 = arith.constant 6 : index
    %c0_226 = arith.constant 0 : index
    %c0_227 = arith.constant 0 : index
    %273 = vector.load %arg1[%c6_225, %c0_226, %c0_227] : memref<8x32x32xf32, #tpu.memory_space<vmem>>, vector<1x32x32xf32>
    %274 = vector.shape_cast %273 : vector<1x32x32xf32> to vector<32x32xf32>
    %275 = vector.broadcast %272 : f32 to vector<32x32xf32>
    %276 = arith.mulf %275, %274 : vector<32x32xf32>
    %277 = arith.addf %271, %276 : vector<32x32xf32>
    %c5_228 = arith.constant 5 : index
    %c7_229 = arith.constant 7 : index
    %278 = memref.load %arg0[%c5_228, %c7_229] : memref<8x8xf32, #tpu.memory_space<smem>>
    %c7_230 = arith.constant 7 : index
    %c0_231 = arith.constant 0 : index
    %c0_232 = arith.constant 0 : index
    %279 = vector.load %arg1[%c7_230, %c0_231, %c0_232] : memref<8x32x32xf32, #tpu.memory_space<vmem>>, vector<1x32x32xf32>
    %280 = vector.shape_cast %279 : vector<1x32x32xf32> to vector<32x32xf32>
    %281 = vector.broadcast %278 : f32 to vector<32x32xf32>
    %282 = arith.mulf %281, %280 : vector<32x32xf32>
    %283 = arith.addf %277, %282 : vector<32x32xf32>
    %cst_233 = arith.constant dense<0.000000e+00> : vector<32x32xf32>
    %284 = tpu.matmul %236, %283, %cst_233 {dimension_numbers = #tpu.dot_dimension_numbers<[1], [0], [0], [1], [0, 0, 1, 1], [], []>} : vector<32x32xf32>, vector<32x32xf32>, vector<32x32xf32> -> vector<32x32xf32>
    %c6_234 = arith.constant 6 : index
    %c0_235 = arith.constant 0 : index
    %285 = memref.load %arg0[%c6_234, %c0_235] : memref<8x8xf32, #tpu.memory_space<smem>>
    %c0_236 = arith.constant 0 : index
    %c0_237 = arith.constant 0 : index
    %c0_238 = arith.constant 0 : index
    %286 = vector.load %arg1[%c0_236, %c0_237, %c0_238] : memref<8x32x32xf32, #tpu.memory_space<vmem>>, vector<1x32x32xf32>
    %287 = vector.shape_cast %286 : vector<1x32x32xf32> to vector<32x32xf32>
    %288 = vector.broadcast %285 : f32 to vector<32x32xf32>
    %289 = arith.mulf %288, %287 : vector<32x32xf32>
    %c6_239 = arith.constant 6 : index
    %c1_240 = arith.constant 1 : index
    %290 = memref.load %arg0[%c6_239, %c1_240] : memref<8x8xf32, #tpu.memory_space<smem>>
    %c1_241 = arith.constant 1 : index
    %c0_242 = arith.constant 0 : index
    %c0_243 = arith.constant 0 : index
    %291 = vector.load %arg1[%c1_241, %c0_242, %c0_243] : memref<8x32x32xf32, #tpu.memory_space<vmem>>, vector<1x32x32xf32>
    %292 = vector.shape_cast %291 : vector<1x32x32xf32> to vector<32x32xf32>
    %293 = vector.broadcast %290 : f32 to vector<32x32xf32>
    %294 = arith.mulf %293, %292 : vector<32x32xf32>
    %295 = arith.addf %289, %294 : vector<32x32xf32>
    %c6_244 = arith.constant 6 : index
    %c2_245 = arith.constant 2 : index
    %296 = memref.load %arg0[%c6_244, %c2_245] : memref<8x8xf32, #tpu.memory_space<smem>>
    %c2_246 = arith.constant 2 : index
    %c0_247 = arith.constant 0 : index
    %c0_248 = arith.constant 0 : index
    %297 = vector.load %arg1[%c2_246, %c0_247, %c0_248] : memref<8x32x32xf32, #tpu.memory_space<vmem>>, vector<1x32x32xf32>
    %298 = vector.shape_cast %297 : vector<1x32x32xf32> to vector<32x32xf32>
    %299 = vector.broadcast %296 : f32 to vector<32x32xf32>
    %300 = arith.mulf %299, %298 : vector<32x32xf32>
    %301 = arith.addf %295, %300 : vector<32x32xf32>
    %c6_249 = arith.constant 6 : index
    %c3_250 = arith.constant 3 : index
    %302 = memref.load %arg0[%c6_249, %c3_250] : memref<8x8xf32, #tpu.memory_space<smem>>
    %c3_251 = arith.constant 3 : index
    %c0_252 = arith.constant 0 : index
    %c0_253 = arith.constant 0 : index
    %303 = vector.load %arg1[%c3_251, %c0_252, %c0_253] : memref<8x32x32xf32, #tpu.memory_space<vmem>>, vector<1x32x32xf32>
    %304 = vector.shape_cast %303 : vector<1x32x32xf32> to vector<32x32xf32>
    %305 = vector.broadcast %302 : f32 to vector<32x32xf32>
    %306 = arith.mulf %305, %304 : vector<32x32xf32>
    %307 = arith.addf %301, %306 : vector<32x32xf32>
    %c6_254 = arith.constant 6 : index
    %c4_255 = arith.constant 4 : index
    %308 = memref.load %arg0[%c6_254, %c4_255] : memref<8x8xf32, #tpu.memory_space<smem>>
    %c4_256 = arith.constant 4 : index
    %c0_257 = arith.constant 0 : index
    %c0_258 = arith.constant 0 : index
    %309 = vector.load %arg1[%c4_256, %c0_257, %c0_258] : memref<8x32x32xf32, #tpu.memory_space<vmem>>, vector<1x32x32xf32>
    %310 = vector.shape_cast %309 : vector<1x32x32xf32> to vector<32x32xf32>
    %311 = vector.broadcast %308 : f32 to vector<32x32xf32>
    %312 = arith.mulf %311, %310 : vector<32x32xf32>
    %313 = arith.addf %307, %312 : vector<32x32xf32>
    %c6_259 = arith.constant 6 : index
    %c5_260 = arith.constant 5 : index
    %314 = memref.load %arg0[%c6_259, %c5_260] : memref<8x8xf32, #tpu.memory_space<smem>>
    %c5_261 = arith.constant 5 : index
    %c0_262 = arith.constant 0 : index
    %c0_263 = arith.constant 0 : index
    %315 = vector.load %arg1[%c5_261, %c0_262, %c0_263] : memref<8x32x32xf32, #tpu.memory_space<vmem>>, vector<1x32x32xf32>
    %316 = vector.shape_cast %315 : vector<1x32x32xf32> to vector<32x32xf32>
    %317 = vector.broadcast %314 : f32 to vector<32x32xf32>
    %318 = arith.mulf %317, %316 : vector<32x32xf32>
    %319 = arith.addf %313, %318 : vector<32x32xf32>
    %c6_264 = arith.constant 6 : index
    %c6_265 = arith.constant 6 : index
    %320 = memref.load %arg0[%c6_264, %c6_265] : memref<8x8xf32, #tpu.memory_space<smem>>
    %c6_266 = arith.constant 6 : index
    %c0_267 = arith.constant 0 : index
    %c0_268 = arith.constant 0 : index
    %321 = vector.load %arg1[%c6_266, %c0_267, %c0_268] : memref<8x32x32xf32, #tpu.memory_space<vmem>>, vector<1x32x32xf32>
    %322 = vector.shape_cast %321 : vector<1x32x32xf32> to vector<32x32xf32>
    %323 = vector.broadcast %320 : f32 to vector<32x32xf32>
    %324 = arith.mulf %323, %322 : vector<32x32xf32>
    %325 = arith.addf %319, %324 : vector<32x32xf32>
    %c6_269 = arith.constant 6 : index
    %c7_270 = arith.constant 7 : index
    %326 = memref.load %arg0[%c6_269, %c7_270] : memref<8x8xf32, #tpu.memory_space<smem>>
    %c7_271 = arith.constant 7 : index
    %c0_272 = arith.constant 0 : index
    %c0_273 = arith.constant 0 : index
    %327 = vector.load %arg1[%c7_271, %c0_272, %c0_273] : memref<8x32x32xf32, #tpu.memory_space<vmem>>, vector<1x32x32xf32>
    %328 = vector.shape_cast %327 : vector<1x32x32xf32> to vector<32x32xf32>
    %329 = vector.broadcast %326 : f32 to vector<32x32xf32>
    %330 = arith.mulf %329, %328 : vector<32x32xf32>
    %331 = arith.addf %325, %330 : vector<32x32xf32>
    %c7_274 = arith.constant 7 : index
    %c0_275 = arith.constant 0 : index
    %332 = memref.load %arg0[%c7_274, %c0_275] : memref<8x8xf32, #tpu.memory_space<smem>>
    %c0_276 = arith.constant 0 : index
    %c0_277 = arith.constant 0 : index
    %c0_278 = arith.constant 0 : index
    %333 = vector.load %arg1[%c0_276, %c0_277, %c0_278] : memref<8x32x32xf32, #tpu.memory_space<vmem>>, vector<1x32x32xf32>
    %334 = vector.shape_cast %333 : vector<1x32x32xf32> to vector<32x32xf32>
    %335 = vector.broadcast %332 : f32 to vector<32x32xf32>
    %336 = arith.mulf %335, %334 : vector<32x32xf32>
    %c7_279 = arith.constant 7 : index
    %c1_280 = arith.constant 1 : index
    %337 = memref.load %arg0[%c7_279, %c1_280] : memref<8x8xf32, #tpu.memory_space<smem>>
    %c1_281 = arith.constant 1 : index
    %c0_282 = arith.constant 0 : index
    %c0_283 = arith.constant 0 : index
    %338 = vector.load %arg1[%c1_281, %c0_282, %c0_283] : memref<8x32x32xf32, #tpu.memory_space<vmem>>, vector<1x32x32xf32>
    %339 = vector.shape_cast %338 : vector<1x32x32xf32> to vector<32x32xf32>
    %340 = vector.broadcast %337 : f32 to vector<32x32xf32>
    %341 = arith.mulf %340, %339 : vector<32x32xf32>
    %342 = arith.addf %336, %341 : vector<32x32xf32>
    %c7_284 = arith.constant 7 : index
    %c2_285 = arith.constant 2 : index
    %343 = memref.load %arg0[%c7_284, %c2_285] : memref<8x8xf32, #tpu.memory_space<smem>>
    %c2_286 = arith.constant 2 : index
    %c0_287 = arith.constant 0 : index
    %c0_288 = arith.constant 0 : index
    %344 = vector.load %arg1[%c2_286, %c0_287, %c0_288] : memref<8x32x32xf32, #tpu.memory_space<vmem>>, vector<1x32x32xf32>
    %345 = vector.shape_cast %344 : vector<1x32x32xf32> to vector<32x32xf32>
    %346 = vector.broadcast %343 : f32 to vector<32x32xf32>
    %347 = arith.mulf %346, %345 : vector<32x32xf32>
    %348 = arith.addf %342, %347 : vector<32x32xf32>
    %c7_289 = arith.constant 7 : index
    %c3_290 = arith.constant 3 : index
    %349 = memref.load %arg0[%c7_289, %c3_290] : memref<8x8xf32, #tpu.memory_space<smem>>
    %c3_291 = arith.constant 3 : index
    %c0_292 = arith.constant 0 : index
    %c0_293 = arith.constant 0 : index
    %350 = vector.load %arg1[%c3_291, %c0_292, %c0_293] : memref<8x32x32xf32, #tpu.memory_space<vmem>>, vector<1x32x32xf32>
    %351 = vector.shape_cast %350 : vector<1x32x32xf32> to vector<32x32xf32>
    %352 = vector.broadcast %349 : f32 to vector<32x32xf32>
    %353 = arith.mulf %352, %351 : vector<32x32xf32>
    %354 = arith.addf %348, %353 : vector<32x32xf32>
    %c7_294 = arith.constant 7 : index
    %c4_295 = arith.constant 4 : index
    %355 = memref.load %arg0[%c7_294, %c4_295] : memref<8x8xf32, #tpu.memory_space<smem>>
    %c4_296 = arith.constant 4 : index
    %c0_297 = arith.constant 0 : index
    %c0_298 = arith.constant 0 : index
    %356 = vector.load %arg1[%c4_296, %c0_297, %c0_298] : memref<8x32x32xf32, #tpu.memory_space<vmem>>, vector<1x32x32xf32>
    %357 = vector.shape_cast %356 : vector<1x32x32xf32> to vector<32x32xf32>
    %358 = vector.broadcast %355 : f32 to vector<32x32xf32>
    %359 = arith.mulf %358, %357 : vector<32x32xf32>
    %360 = arith.addf %354, %359 : vector<32x32xf32>
    %c7_299 = arith.constant 7 : index
    %c5_300 = arith.constant 5 : index
    %361 = memref.load %arg0[%c7_299, %c5_300] : memref<8x8xf32, #tpu.memory_space<smem>>
    %c5_301 = arith.constant 5 : index
    %c0_302 = arith.constant 0 : index
    %c0_303 = arith.constant 0 : index
    %362 = vector.load %arg1[%c5_301, %c0_302, %c0_303] : memref<8x32x32xf32, #tpu.memory_space<vmem>>, vector<1x32x32xf32>
    %363 = vector.shape_cast %362 : vector<1x32x32xf32> to vector<32x32xf32>
    %364 = vector.broadcast %361 : f32 to vector<32x32xf32>
    %365 = arith.mulf %364, %363 : vector<32x32xf32>
    %366 = arith.addf %360, %365 : vector<32x32xf32>
    %c7_304 = arith.constant 7 : index
    %c6_305 = arith.constant 6 : index
    %367 = memref.load %arg0[%c7_304, %c6_305] : memref<8x8xf32, #tpu.memory_space<smem>>
    %c6_306 = arith.constant 6 : index
    %c0_307 = arith.constant 0 : index
    %c0_308 = arith.constant 0 : index
    %368 = vector.load %arg1[%c6_306, %c0_307, %c0_308] : memref<8x32x32xf32, #tpu.memory_space<vmem>>, vector<1x32x32xf32>
    %369 = vector.shape_cast %368 : vector<1x32x32xf32> to vector<32x32xf32>
    %370 = vector.broadcast %367 : f32 to vector<32x32xf32>
    %371 = arith.mulf %370, %369 : vector<32x32xf32>
    %372 = arith.addf %366, %371 : vector<32x32xf32>
    %c7_309 = arith.constant 7 : index
    %c7_310 = arith.constant 7 : index
    %373 = memref.load %arg0[%c7_309, %c7_310] : memref<8x8xf32, #tpu.memory_space<smem>>
    %c7_311 = arith.constant 7 : index
    %c0_312 = arith.constant 0 : index
    %c0_313 = arith.constant 0 : index
    %374 = vector.load %arg1[%c7_311, %c0_312, %c0_313] : memref<8x32x32xf32, #tpu.memory_space<vmem>>, vector<1x32x32xf32>
    %375 = vector.shape_cast %374 : vector<1x32x32xf32> to vector<32x32xf32>
    %376 = vector.broadcast %373 : f32 to vector<32x32xf32>
    %377 = arith.mulf %376, %375 : vector<32x32xf32>
    %378 = arith.addf %372, %377 : vector<32x32xf32>
    %cst_314 = arith.constant dense<0.000000e+00> : vector<32x32xf32>
    %379 = tpu.matmul %331, %378, %cst_314 {dimension_numbers = #tpu.dot_dimension_numbers<[1], [0], [0], [1], [0, 0, 1, 1], [], []>} : vector<32x32xf32>, vector<32x32xf32>, vector<32x32xf32> -> vector<32x32xf32>
    %cst_315 = arith.constant dense<0.000000e+00> : vector<32x32xf32>
    %380 = tpu.matmul %94, %189, %cst_315 {dimension_numbers = #tpu.dot_dimension_numbers<[1], [0], [0], [1], [0, 0, 1, 1], [], []>} : vector<32x32xf32>, vector<32x32xf32>, vector<32x32xf32> -> vector<32x32xf32>
    %cst_316 = arith.constant dense<0.000000e+00> : vector<32x32xf32>
    %381 = tpu.matmul %284, %379, %cst_316 {dimension_numbers = #tpu.dot_dimension_numbers<[1], [0], [0], [1], [0, 0, 1, 1], [], []>} : vector<32x32xf32>, vector<32x32xf32>, vector<32x32xf32> -> vector<32x32xf32>
    %cst_317 = arith.constant dense<0.000000e+00> : vector<32x32xf32>
    %382 = tpu.matmul %380, %381, %cst_317 {dimension_numbers = #tpu.dot_dimension_numbers<[1], [0], [0], [1], [0, 0, 1, 1], [], []>} : vector<32x32xf32>, vector<32x32xf32>, vector<32x32xf32> -> vector<32x32xf32>
    %c0_318 = arith.constant 0 : index
    %c0_319 = arith.constant 0 : index
    %383 = vector.load %arg2[%c0_318, %c0_319] : memref<1x32xf32, #tpu.memory_space<vmem>>, vector<1x32xf32>
    %cst_320 = arith.constant dense<0.000000e+00> : vector<1x32xf32>
    %384 = tpu.matmul %383, %382, %cst_320 {dimension_numbers = #tpu.dot_dimension_numbers<[1], [0], [0], [1], [0, 0, 1, 1], [], []>} : vector<1x32xf32>, vector<32x32xf32>, vector<1x32xf32> -> vector<1x32xf32>
    %c0_321 = arith.constant 0 : index
    %c0_322 = arith.constant 0 : index
    %385 = vector.load %arg3[%c0_321, %c0_322] : memref<1x32xf32, #tpu.memory_space<vmem>>, vector<1x32xf32>
    tpu.vector_store %arg3[%c0_321, %c0_322], %384 {strides = array<i32>} : memref<1x32xf32, #tpu.memory_space<vmem>>, vector<1x32xf32>,
    return
  }
}

</mosaic_0001>

<bundles_post_ra>
// kernel: tpu_custom_call.1
= control target key start
LH: loop header
LB: loop body
LE: loop exit
PB: predicated region body
PF: predicated region fallthrough
CT: control target
= control target key end

     0   :  { %8 = vsyncpa [#allocation5], 0  ;;  %s2813_s0 = inlined_call_operand.hbm [shape: f32[8,8], index: 0, kind: input, shape index: {}]   ;;  %s2814_s1 = inlined_call_operand.hbm [shape: f32[8,32,32], index: 1, kind: input, shape index: {}]   ;;  %s2815_s2 = inlined_call_operand.vmem [shape: f32[1,32], index: 2, kind: input, shape index: {}]   ;;  %s2816_s3 = inlined_call_operand.hbm [shape: f32[1,32], index: 3, kind: output, shape index: {}]  }
   0x1   :  { %9 = vsyncpa [#allocation3], 0 }
   0x2   :  { %10 = vsyncpa [#allocation4], 0  ;;  %s1823_s14 = scalar_lea.hbm %s2813_s0, 128 }
   0x3   :  { %p1824_p0 = scmp.ne.s32.totalorder %s2813_s0, %s1823_s14  ;;  %p1827_p1 = scmp.lt.u32.totalorder %s1823_s14, %s2813_s0 }
   0x5   :  { %p1829_p2 = pnand %p1827_p1, %p1824_p0 }
   0x7   :  { %1832 = shalt.err (!%p1829_p2)
}
   0x8   :  { %s1883_s19 = smov [#allocation2]   ;;  %s1884_s22 = smov [#allocation6]  }
   0x9   :  { %18 = dma.hbm_to_smem %s2813_s0, 128, %s1883_s19, [#allocation5]  }
   0xa   :  { %s24_s23 = sshll.u32 %s1884_s22, 4  ;;  %s1833_s26 = scalar_lea.hbm %s2814_s1, 4096  ;;  %s25_s23 = int_to_ptr.vmem [resolvable:$true] %s24_s23 }
   0xb   :  { %p1834_p3 = scmp.ne.s32.totalorder %s2814_s1, %s1833_s26  ;;  %p1837_p4 = scmp.lt.u32.totalorder %s1833_s26, %s2814_s1 }
   0xd   :  { %p1839_p5 = pnand %p1837_p4, %p1834_p3 }
   0xf   :  { %1842 = shalt.err (!%p1839_p5)
}
  0x10   :  { %s1843_s4 = scalar_lea.vmem %s25_s23, 4096  ;;  %p1848_p7 = scmp.lt.s32.totalorder %s25_s23, %s25_s23 }
  0x11   :  { %p1844_p6 = scmp.ne.s32.totalorder %s25_s23, %s1843_s4  ;;  %p1849_p8 = scmp.lt.s32.totalorder %s1843_s4, %s1843_s4 }
  0x13   :  { %p1850_p9 = por %p1849_p8, %p1848_p7 }
  0x15   :  { %p1851_p10 = pnand %p1850_p9, %p1844_p6 }
  0x17   :  { %1854 = shalt.err (!%p1851_p10)
}
  0x18   :  { %s1885_s0 = smov 128   ;;  %s1886_s5 = smov 8  }
  0x19   :  { %30 = dma.hbm_to_vmem [thread:$0]  %s2814_s1, 4096, %s25_s23, [#allocation3], %s1885_s0, %s1885_s0, %s1886_s5  }
  0x1a   :  { %1877 = dma.done.wait [#allocation5], 128  }
  0x1b   :  { %1878 = vsyncadd [#allocation5], 4294967168 }
  0x1c   :  { %1879 = dma.done.wait [#allocation3], 4096  }
  0x1d   :  { %1880 = vsyncadd [#allocation3], 4294963200 }
  0x1e   :  { %39 = sfence }
  0x1f   :  { %s1486_s8 = sld [smem:[#allocation2 + $0x180]]  ;;  %s1487_s9 = sld [smem:[#allocation2 + $0x181]]  ;;  %v1935_v0 = vld [vmem:[#allocation6] sm:$0xff]  ;;  %v1937_v1 = vld [vmem:[#allocation6 + $0x8] sm:$0xff]  ;;  %v1951_v5 = vld [vmem:[#allocation6 + $0x10] sm:$0xff]  ;;  %vm231_vm0 = vcmask 261120  }
  0x20   :  { %s1488_s10 = sld [smem:[#allocation2 + $0x182]]  ;;  %2869 = vst [vmem:[#allocation11_spill] sm:$0xff] %v1935_v0  ;;  %s1489_s11 = sld [smem:[#allocation2 + $0x183]]  ;;  %2870 = vst [vmem:[#allocation12_spill] sm:$0xff] %v1937_v1  ;;  %v1939_v2 = vld [vmem:[#allocation6 + $0x20] sm:$0xff]  ;;  %v1941_v3 = vld [vmem:[#allocation6 + $0x28] sm:$0xff] }
  0x21   :  { %2871 = vst [vmem:[#allocation13_spill] sm:$0xff] %v1941_v3  ;;  %s1943_s12 = sld [smem:[#allocation2 + $0x184]]  ;;  %v1945_v4 = vld [vmem:[#allocation6 + $0x40] sm:$0xff]  ;;  %s1947_s1 = sld [smem:[#allocation2 + $0x185]]  ;;  %v1953_v6 = vld [vmem:[#allocation6 + $0x48] sm:$0xff]  ;;  %v1957_v8 = vld [vmem:[#allocation6 + $0x18] sm:$0xff] }
  0x22   :  { %s1949_s13 = sld [smem:[#allocation2 + $0x186]]  ;;  %2872 = vst [vmem:[#allocation14_spill] sm:$0xff] %v1953_v6  ;;  %s1955_s14 = sld [smem:[#allocation2 + $0x187]]  ;;  %2873 = vst [vmem:[#allocation15_spill] sm:$0xff] %v1957_v8  ;;  %v1959_v9 = vld [vmem:[#allocation6 + $0x30] sm:$0xff]  ;;  %v1961_v10 = vld [vmem:[#allocation6 + $0x60] sm:$0xff] }
  0x23   :  { %v1963_v11 = vld [vmem:[#allocation6 + $0x68] sm:$0xff]  ;;  %v1970_v19 = vld [vmem:[#allocation6 + $0x38] sm:$0xff]  ;;  %v1973_v21 = vld [vmem:[#allocation6 + $0x80] sm:$0xff]  ;;  %s2010_s15 = sld [smem:[#allocation2 + $0x100]]  ;;  %s2012_s16 = sld [smem:[#allocation2 + $0x101]]  ;;  %vm1888_vm1 = vmmov 0  }
  0x24   :  { %2874 = vst [vmem:[#allocation16_spill] sm:$0xff] %v1963_v11  ;;  %2875 = vst [vmem:[#allocation17_spill] sm:$0xff] %v1970_v19  ;;  %v1975_v22 = vld [vmem:[#allocation6 + $0x88] sm:$0xff]  ;;  %v1977_v23 = vld [vmem:[#allocation6 + $0xa0] sm:$0xff]  ;;  %s2026_s17 = sld [smem:[#allocation2 + $0x102]]  ;;  %s2028_s18 = sld [smem:[#allocation2 + $0x103]] }
  0x25   :  { %v406_v7 = vstv %s1486_s8  ;;  %v412_v14 = vstv %s1487_s9  ;;  %2876 = vst [vmem:[#allocation18_spill] sm:$0xff] %v1975_v22  ;;  %v1982_v28 = vld [vmem:[#allocation6 + $0xa8] sm:$0xff]  ;;  %v1984_v29 = vld [vmem:[#allocation6 + $0xc0] sm:$0xff]  ;;  %v2000_v45 = vld [vmem:[#allocation6 + $0x50] sm:$0xff]  ;;  %s2043_s19 = sld [smem:[#allocation2 + $0x104]]  ;;  %s2045_s20 = sld [smem:[#allocation2 + $0x105]] }
  0x26   :  { %v407_v12 = vmul.f32 %v406_v7, %v1935_v0  ;;  %v408_v13 = vmul.f32 %v406_v7, %v1937_v1  ;;  %v409_v15 = vmul.f32 %v406_v7, %v1951_v5  ;;  %v413_v16 = vmul.f32 %v412_v14, %v1939_v2  ;;  %2877 = vst [vmem:[#allocation19_spill] sm:$0xff] %v1982_v28  ;;  %v1986_v30 = vld [vmem:[#allocation6 + $0xc8] sm:$0xff]  ;;  %v1994_v39 = vld [vmem:[#allocation6 + $0xe0] sm:$0xff]  ;;  %v2006_v50 = vld [vmem:[#allocation6 + $0x58] sm:$0xff]  ;;  %s2050_s21 = sld [smem:[#allocation2 + $0x106]]  ;;  %s2055_s22 = sld [smem:[#allocation2 + $0x107]] }
  0x27   :  { %v414_v17 = vmul.f32 %v412_v14, %v1941_v3  ;;  %v422_v18 = vstv %s1488_s10  ;;  %v410_v20 = vmul.f32 %v406_v7, %v1957_v8  ;;  %v432_v26 = vstv %s1489_s11  ;;  %2878 = vst [vmem:[#allocation20_spill] sm:$0xff] %v1986_v30  ;;  %2879 = vst [vmem:[#allocation21_spill] sm:$0xff] %v1994_v39  ;;  %v1996_v40 = vld [vmem:[#allocation6 + $0xe8] sm:$0xff]  ;;  %v2008_v51 = vld [vmem:[#allocation6 + $0x70] sm:$0xff]  ;;  %s2058_s23 = sld [smem:[#allocation2 + $0x80]]  ;;  %s2060_s24 = sld [smem:[#allocation2 + $0x81]] }
  0x28   :  { %v423_v24 = vmul.f32 %v422_v18, %v1945_v4  ;;  %v424_v25 = vmul.f32 %v422_v18, %v1953_v6  ;;  %v415_v27 = vmul.f32 %v412_v14, %v1959_v9  ;;  %v417_v31 = vadd.f32 %v413_v16, %v407_v12  ;;  %2880 = vst [vmem:[#allocation22_spill] sm:$0xff] %v1996_v40  ;;  %v2015_v55 = vld [vmem:[#allocation6 + $0x78] sm:$0xff]  ;;  %v2017_v56 = vld [vmem:[#allocation6 + $0x90] sm:$0xff]  ;;  %s2071_s25 = sld [smem:[#allocation2 + $0x82]]  ;;  %s2073_s26 = sld [smem:[#allocation2 + $0x83]] }
  0x29   :  { %v418_v32 = vadd.f32 %v414_v17, %v408_v13  ;;  %v433_v33 = vmul.f32 %v432_v26, %v1961_v10  ;;  %v434_v34 = vmul.f32 %v432_v26, %v1963_v11  ;;  %v442_v35 = vstv %s1943_s12  ;;  %2881 = vst [vmem:[#allocation23_spill] sm:$0xff] %v2006_v50  ;;  %2882 = vst [vmem:[#allocation24_spill] sm:$0xff] %v2015_v55  ;;  %v2019_v57 = vld [vmem:[#allocation6 + $0x98] sm:$0xff]  ;;  %v2023_v61 = vld [vmem:[#allocation6 + $0xb0] sm:$0xff]  ;;  %s2087_s27 = sld [smem:[#allocation2 + $0x84]]  ;;  %s2095_s28 = sld [smem:[#allocation2 + $0x85]] }
  0x2a   :  { %v452_v36 = vstv %s1947_s1  ;;  %v462_v37 = vstv %s1949_s13  ;;  %v416_v38 = vmul.f32 %v412_v14, %v1970_v19  ;;  %v427_v41 = vadd.f32 %v423_v24, %v417_v31  ;;  %2883 = vst [vmem:[#allocation25_spill] sm:$0xff] %v2019_v57  ;;  %v2030_v13 = vld [vmem:[#allocation6 + $0xb8] sm:$0xff]  ;;  %v2032_v14 = vld [vmem:[#allocation6 + $0xd0] sm:$0xff]  ;;  %s2104_s29 = sld [smem:[#allocation2 + $0x86]]  ;;  %s2106_s30 = sld [smem:[#allocation2 + $0x87]] }
  0x2b   :  { %v428_v42 = vadd.f32 %v424_v25, %v418_v32  ;;  %v443_v43 = vmul.f32 %v442_v35, %v1973_v21  ;;  %v444_v44 = vmul.f32 %v442_v35, %v1975_v22  ;;  %v453_v46 = vmul.f32 %v452_v36, %v1977_v23  ;;  %2884 = vst [vmem:[#allocation26_spill] sm:$0xff] %v2030_v13  ;;  %v2038_v24 = vld [vmem:[#allocation6 + $0xf0] sm:$0xff]  ;;  %s2146_s4 = sld [smem:[#allocation2 + $0x380]]  ;;  %s2152_s0 = sld [smem:[#allocation2 + $0x381]] }
  0x2c   :  { %v454_v47 = vmul.f32 %v452_v36, %v1982_v28  ;;  %v463_v48 = vmul.f32 %v462_v37, %v1984_v29  ;;  %v464_v49 = vmul.f32 %v462_v37, %v1986_v30  ;;  %v437_v52 = vadd.f32 %v433_v33, %v427_v41  ;;  %s2163_s5 = sld [smem:[#allocation2 + $0x382]]  ;;  %s2167_s6 = sld [smem:[#allocation2 + $0x383]] }
  0x2d   :  { %v438_v53 = vadd.f32 %v434_v34, %v428_v42  ;;  %v472_v54 = vstv %s1955_s14  ;;  %v419_v58 = vadd.f32 %v415_v27, %v409_v15  ;;  %v420_v62 = vadd.f32 %v416_v38, %v410_v20  ;;  %v2034_v15 = vld [vmem:[#allocation6 + $0xd8] sm:$0xff]  ;;  %s2169_s7 = sld [smem:[#allocation2 + $0x384]]  ;;  %s2194_s8 = sld [smem:[#allocation2 + $0x385]] }
  0x2e   :  { %v473_v59 = vmul.f32 %v472_v54, %v1994_v39  ;;  %v474_v60 = vmul.f32 %v472_v54, %v1996_v40  ;;  %v425_v63 = vmul.f32 %v422_v18, %v2000_v45  ;;  %v447_v7 = vadd.f32 %v443_v43, %v437_v52  ;;  %2885 = vst [vmem:[#allocation27_spill] sm:$0xff] %v2034_v15  ;;  %v2047_v34 = vld [vmem:[#allocation6 + $0xf8] sm:$0xff]  ;;  %s2196_s9 = sld [smem:[#allocation2 + $0x386]]  ;;  %s2210_s10 = sld [smem:[#allocation2 + $0x387]] }
  0x2f   :  { %v448_v12 = vadd.f32 %v444_v44, %v438_v53  ;;  %v426_v16 = vmul.f32 %v422_v18, %v2006_v50  ;;  %v435_v17 = vmul.f32 %v432_v26, %v2008_v51  ;;  %v436_v25 = vmul.f32 %v432_v26, %v2015_v55  ;;  %2886 = vst [vmem:[#allocation28_spill] sm:$0xff] %v2047_v34  ;;  %s2325_s11 = sld [smem:[#allocation2]]  ;;  %s2327_s12 = sld [smem:[#allocation2 + $0x1]] }
  0x30   :  { %v429_v20 = vadd.f32 %v425_v63, %v419_v58  ;;  %v445_v27 = vmul.f32 %v442_v35, %v2017_v56  ;;  %v446_v31 = vmul.f32 %v442_v35, %v2019_v57  ;;  %v457_v32 = vadd.f32 %v453_v46, %v447_v7  ;;  %s2333_s1 = sld [smem:[#allocation2 + $0x2]]  ;;  %s2342_s13 = sld [smem:[#allocation2 + $0x3]] }
  0x31   :  { %v458_v33 = vadd.f32 %v454_v47, %v448_v12  ;;  %v430_v18 = vadd.f32 %v426_v16, %v420_v62  ;;  %v455_v38 = vmul.f32 %v452_v36, %v2023_v61  ;;  %v456_v41 = vmul.f32 %v452_v36, %v2030_v13  ;;  %s2344_s14 = sld [smem:[#allocation2 + $0x4]] }
  0x32   :  { %v439_v26 = vadd.f32 %v435_v17, %v429_v20  ;;  %v465_v35 = vmul.f32 %v462_v37, %v2032_v14  ;;  %v466_v42 = vmul.f32 %v462_v37, %v2034_v15  ;;  %v467_v43 = vadd.f32 %v463_v48, %v457_v32 }
  0x33   :  { %v468_v44 = vadd.f32 %v464_v49, %v458_v33  ;;  %v440_v46 = vadd.f32 %v436_v25, %v430_v18  ;;  %v475_v47 = vmul.f32 %v472_v54, %v2038_v24  ;;  %v476_v36 = vmul.f32 %v472_v54, %v2047_v34 }
  0x34   :  { %v449_v52 = vadd.f32 %v445_v27, %v439_v26  ;;  %v2064_v53 = vstv %s2010_s15  ;;  %v2067_v58 = vstv %s2012_s16  ;;  %v477_v37 = vadd.f32 %v473_v59, %v467_v43  ;;  %s2352_s15 = sld [smem:[#allocation2 + $0x5]]  ;;  %s2358_s16 = sld [smem:[#allocation2 + $0x6]] }
  0x35   :  { %v478_v62 = vadd.f32 %v474_v60, %v468_v44  ;;  %v450_v48 = vadd.f32 %v446_v31, %v440_v46  ;;  %v331_v49 = vmul.f32 %v2064_v53, %v1935_v0  ;;  %v337_v54 = vmul.f32 %v2067_v58, %v1939_v2 }
  0x36   :  { %v459_v63 = vadd.f32 %v455_v38, %v449_v52  ;;  %v2078_v7 = vstv %s2026_s17  ;;  %v2081_v12 = vstv %s2028_s18  ;;  %v2090_v27 = vstv %s2043_s19  ;;  %s2364_s17 = sld [smem:[#allocation2 + $0x7]]  ;;  %s2366_s18 = sld [smem:[#allocation2 + $0x300]] }
  0x37   :  { %v1729_v59 = vpack.c.bf16 %v478_v62, %v477_v37  ;;  %v460_v60 = vadd.f32 %v456_v41, %v450_v48  ;;  %v347_v16 = vmul.f32 %v2078_v7, %v1945_v4  ;;  %v357_v17 = vmul.f32 %v2081_v12, %v1961_v10  ;;  %s2380_s19 = sld [smem:[#allocation2 + $0x301]] }
  0x38   :  { %v469_v20 = vadd.f32 %v465_v35, %v459_v63  ;;  %v341_v25 = vadd.f32 %v337_v54, %v331_v49  ;;  %v2093_v31 = vstv %s2045_s20  ;;  %v367_v33 = vmul.f32 %v2090_v27, %v1973_v21  ;;  %s2382_s20 = sld [smem:[#allocation2 + $0x302]] }
  0x39   :  { %1730 = vmatprep.subr.bf16.mxu1 %v1729_v59  ;;  %v470_v32 = vadd.f32 %v466_v42, %v460_v60  ;;  %v377_v18 = vmul.f32 %v2093_v31, %v1977_v23  ;;  %v2102_v38 = vstv %s2050_s21  ;;  %v2111_v42 = vstv %s2055_s22  ;;  %s2397_s21 = sld [smem:[#allocation2 + $0x303]]  ;;  %s2399_s22 = sld [smem:[#allocation2 + $0x304]] }
  0x3a   :  { %1732 = vmatpush3.bf16.msra.mxu1 %v1729_v59  ;;  %v479_v26 = vadd.f32 %v475_v47, %v469_v20  ;;  %v351_v41 = vadd.f32 %v347_v16, %v341_v25  ;;  %v387_v35 = vmul.f32 %v2102_v38, %v1984_v29  ;;  %v397_v44 = vmul.f32 %v2111_v42, %v1994_v39 }
  0x3b   :  { %v480_v43 = vadd.f32 %v476_v36, %v470_v32  ;;  %v2116_v46 = vstv %s2058_s23  ;;  %v2119_v52 = vstv %s2060_s24  ;;  %v2130_v63 = vstv %s2071_s25  ;;  %s2410_s23 = sld [smem:[#allocation2 + $0x305]]  ;;  %s2412_s24 = sld [smem:[#allocation2 + $0x306]] }
  0x3c   :  { %v361_v37 = vadd.f32 %v357_v17, %v351_v41  ;;  %v157_v62 = vmul.f32 %v2116_v46, %v1935_v0  ;;  %v158_v47 = vmul.f32 %v2116_v46, %v1937_v1  ;;  %v163_v48 = vmul.f32 %v2119_v52, %v1939_v2  ;;  %s2426_s25 = sld [smem:[#allocation2 + $0x307]] }
  0x3d   :  { %v1733_v49 = vpack.c.bf16 %v480_v43, %v479_v26  ;;  %v164_v36 = vmul.f32 %v2119_v52, %v1941_v3  ;;  %v2133_v54 = vstv %s2073_s26  ;;  %v173_v16 = vmul.f32 %v2130_v63, %v1945_v4  ;;  %s2446_s26 = sld [smem:[#allocation2 + $0x280]] }
  0x3e   :  { %v371_v59 = vadd.f32 %v367_v33, %v361_v37  ;;  %v167_v60 = vadd.f32 %v163_v48, %v157_v62  ;;  %v174_v17 = vmul.f32 %v2130_v63, %v1953_v6  ;;  %v183_v25 = vmul.f32 %v2133_v54, %v1961_v10 }
  0x3f   :  { %1734 = vmatprep.subr.bf16.mxu1 %v1733_v49  ;;  %v168_v20 = vadd.f32 %v164_v36, %v158_v47  ;;  %v184_v32 = vmul.f32 %v2133_v54, %v1963_v11  ;;  %v2144_v26 = vstv %s2087_s27  ;;  %v2155_v47 = vstv %s2095_s28  ;;  %s2458_s27 = sld [smem:[#allocation2 + $0x281]]  ;;  %s2460_s28 = sld [smem:[#allocation2 + $0x282]] }
  0x40   :  { %1736 = vmatpush3.bf16.msra.mxu1 %v1733_v49  ;;  %v381_v33 = vadd.f32 %v377_v18, %v371_v59  ;;  %v177_v41 = vadd.f32 %v173_v16, %v167_v60  ;;  %v193_v43 = vmul.f32 %v2144_v26, %v1973_v21  ;;  %v194_v37 = vmul.f32 %v2144_v26, %v1975_v22 }
  0x41   :  { %v178_v62 = vadd.f32 %v174_v17, %v168_v20  ;;  %2887 = vst [vmem:[#allocation29_spill] sm:$0xff] %v2155_v47  ;;  %v2158_v48 = vstv %s2104_s29  ;;  %v2161_v36 = vstv %s2106_s30  ;;  %v203_v59 = vmul.f32 %v2155_v47, %v1977_v23  ;;  %s2488_s29 = sld [smem:[#allocation2 + $0x283]]  ;;  %s2490_s30 = sld [smem:[#allocation2 + $0x284]] }
  0x42   :  { %2888 = vst [vmem:[#allocation30_spill] sm:$0xff] %v2158_v48  ;;  %2889 = vst [vmem:[#allocation31_spill] sm:$0xff] %v2161_v36  ;;  %v391_v18 = vadd.f32 %v387_v35, %v381_v33  ;;  %v187_v49 = vadd.f32 %v183_v25, %v177_v41  ;;  %v204_v16 = vmul.f32 %v2155_v47, %v1982_v28  ;;  %v2208_v13 = vstv %s2152_s0  ;;  %s2519_s0 = sld [smem:[#allocation2 + $0x286]] }
  0x43   :  { %v188_v60 = vadd.f32 %v184_v32, %v178_v62  ;;  %v213_v17 = vmul.f32 %v2158_v48, %v1984_v29  ;;  %v214_v20 = vmul.f32 %v2158_v48, %v1986_v30  ;;  %v223_v25 = vmul.f32 %v2161_v36, %v1994_v39 }
  0x44   :  { %v401_v34 = vadd.f32 %v397_v44, %v391_v18  ;;  %v197_v35 = vadd.f32 %v193_v43, %v187_v49  ;;  %v332_v33 = vmul.f32 %v2064_v53, %v1937_v1  ;;  %v224_v32 = vmul.f32 %v2161_v36, %v1996_v40 }
  0x45   :  { %v198_v41 = vadd.f32 %v194_v37, %v188_v60  ;;  %v338_v62 = vmul.f32 %v2067_v58, %v1941_v3  ;;  %v348_v15 = vmul.f32 %v2078_v7, %v1953_v6  ;;  %v358_v43 = vmul.f32 %v2081_v12, %v1963_v11 }
  0x46   :  { %1634 = vmatprep.mubr.msk.f32.mxu1 %vm231_vm0, %v401_v34  ;;  %v207_v44 = vadd.f32 %v203_v59, %v197_v35  ;;  %v368_v18 = vmul.f32 %v2090_v27, %v1975_v22  ;;  %v378_v37 = vmul.f32 %v2093_v31, %v1982_v28  ;;  %v388_v34 = vmul.f32 %v2102_v38, %v1986_v30 }
  0x47   :  { %v208_v49 = vadd.f32 %v204_v16, %v198_v41  ;;  %v342_v60 = vadd.f32 %v338_v62, %v332_v33  ;;  %v2201_v59 = vstv %s2146_s4  ;;  %v911_v33 = vmul.f32 %v2208_v13, %v1939_v2  ;;  %s2517_s4 = sld [smem:[#allocation2 + $0x285]] }
  0x48   :  { %2890 = vst [vmem:[#allocation32_spill] sm:$0xff] %v2201_v59  ;;  %v217_v35 = vadd.f32 %v213_v17, %v207_v44  ;;  %v905_v36 = vmul.f32 %v2201_v59, %v1935_v0  ;;  %v906_v48 = vmul.f32 %v2201_v59, %v1937_v1  ;;  %v912_v41 = vmul.f32 %v2208_v13, %v1941_v3 }
  0x49   :  { %v218_v47 = vadd.f32 %v214_v20, %v208_v49  ;;  %v352_v16 = vadd.f32 %v348_v15, %v342_v60  ;;  %v2217_v17 = vstv %s2163_s5  ;;  %v2220_v44 = vstv %s2167_s6  ;;  %s2537_s5 = sld [smem:[#allocation2 + $0x287]]  ;;  %s2666_s6 = sld [smem:[#allocation2 + $0x200]] }
  0x4a   :  { %v227_v62 = vadd.f32 %v223_v25, %v217_v35  ;;  %v2223_v0 = vstv %s2169_s7  ;;  %v915_v57 = vadd.f32 %v911_v33, %v905_v36  ;;  %v916_v20 = vadd.f32 %v912_v41, %v906_v48  ;;  %s2677_s7 = sld [smem:[#allocation2 + $0x201]] }
  0x4b   :  { %v228_v1 = vadd.f32 %v224_v32, %v218_v47  ;;  %v362_v59 = vadd.f32 %v358_v43, %v352_v16  ;;  %v921_v15 = vmul.f32 %v2217_v17, %v1945_v4  ;;  %v922_v49 = vmul.f32 %v2217_v17, %v1953_v6 }
  0x4c   :  { %v931_v25 = vmul.f32 %v2220_v44, %v1961_v10  ;;  %v932_v60 = vmul.f32 %v2220_v44, %v1963_v11  ;;  %v941_v47 = vmul.f32 %v2223_v0, %v1973_v21  ;;  %v942_v48 = vmul.f32 %v2223_v0, %v1975_v22 }
  0x4d   :  { %v1721_v35 = vpack.c.bf16 %v228_v1, %v227_v62  ;;  %v372_v3 = vadd.f32 %v368_v18, %v362_v59  ;;  %v925_v36 = vadd.f32 %v921_v15, %v915_v57  ;;  %v926_v32 = vadd.f32 %v922_v49, %v916_v20 }
  0x4e   :  { %v2238_v43 = vstv %s2194_s8  ;;  %v2241_v16 = vstv %s2196_s9  ;;  %v398_v41 = vmul.f32 %v2111_v42, %v1996_v40  ;;  %v2252_v20 = vstv %s2210_s10  ;;  %s2679_s8 = sld [smem:[#allocation2 + $0x202]]  ;;  %s2689_s9 = sld [smem:[#allocation2 + $0x203]] }
  0x4f   :  { %1722 = vmatprep.subr.bf16.mxu0 %v1721_v35  ;;  %v382_v33 = vadd.f32 %v378_v37, %v372_v3  ;;  %v951_v1 = vmul.f32 %v2238_v43, %v1977_v23  ;;  %v952_v18 = vmul.f32 %v2238_v43, %v1982_v28  ;;  %v935_v59 = vadd.f32 %v931_v25, %v925_v36  ;;  %s2704_s10 = sld [smem:[#allocation2 + $0x204]] }
  0x50   :  { %v936_v62 = vadd.f32 %v932_v60, %v926_v32  ;;  %v961_v57 = vmul.f32 %v2241_v16, %v1984_v29  ;;  %1724 = vmatpush3.bf16.msra.mxu0 %v1721_v35  ;;  %v962_v3 = vmul.f32 %v2241_v16, %v1986_v30  ;;  %v971_v37 = vmul.f32 %v2252_v20, %v1994_v39 }
  0x51   :  { %v392_v15 = vadd.f32 %v388_v34, %v382_v33  ;;  %v333_v49 = vmul.f32 %v2064_v53, %v1951_v5  ;;  %v945_v22 = vadd.f32 %v941_v47, %v935_v59  ;;  %v339_v25 = vmul.f32 %v2067_v58, %v1959_v9 }
  0x52   :  { %v946_v28 = vadd.f32 %v942_v48, %v936_v62  ;;  %v349_v60 = vmul.f32 %v2078_v7, %v2000_v45  ;;  %v972_v34 = vmul.f32 %v2252_v20, %v1996_v40  ;;  %v359_v35 = vmul.f32 %v2081_v12, %v2008_v51 }
  0x53   :  { %v402_v36 = vadd.f32 %v398_v41, %v392_v15  ;;  %v369_v32 = vmul.f32 %v2090_v27, %v2017_v56  ;;  %v955_v33 = vadd.f32 %v951_v1, %v945_v22  ;;  %v343_v47 = vadd.f32 %v339_v25, %v333_v49 }
  0x54   :  { %v956_v30 = vadd.f32 %v952_v18, %v946_v28  ;;  %v379_v48 = vmul.f32 %v2093_v31, %v2023_v61  ;;  %v389_v41 = vmul.f32 %v2102_v38, %v2032_v14  ;;  %v159_v59 = vmul.f32 %v2116_v46, %v1951_v5 }
  0x55   :  { %1635 = vmatmul.mubr.msk.f32.vlgmr.msra.gmra.mrb[0].mxu1 %vm231_vm0, %v402_v36  ;;  %v160_v62 = vmul.f32 %v2116_v46, %v1957_v8  ;;  %v165_v15 = vmul.f32 %v2119_v52, %v1959_v9  ;;  %v965_v22 = vadd.f32 %v961_v57, %v955_v33  ;;  %v353_v1 = vadd.f32 %v349_v60, %v343_v47  ;;  %v2891_v47 = vld [vmem:[#allocation25_spill] sm:$0xff] }
  0x56   :  { %v966_v28 = vadd.f32 %v962_v3, %v956_v30  ;;  %v166_v18 = vmul.f32 %v2119_v52, %v1970_v19  ;;  %v175_v25 = vmul.f32 %v2130_v63, %v2000_v45  ;;  %v176_v36 = vmul.f32 %v2130_v63, %v2006_v50 }
  0x57   :  { %v169_v49 = vadd.f32 %v165_v15, %v159_v59  ;;  %v185_v40 = vmul.f32 %v2133_v54, %v2008_v51  ;;  %v975_v46 = vadd.f32 %v971_v37, %v965_v22  ;;  %v363_v6 = vadd.f32 %v359_v35, %v353_v1  ;;  %v2894_v22 = vld [vmem:[#allocation30_spill] sm:$0xff] }
  0x58   :  { %v976_v11 = vadd.f32 %v972_v34, %v966_v28  ;;  %v170_v39 = vadd.f32 %v166_v18, %v160_v62  ;;  %v399_v30 = vmul.f32 %v2111_v42, %v2038_v24  ;;  %v186_v52 = vmul.f32 %v2133_v54, %v2015_v55  ;;  %v2892_v34 = vld [vmem:[#allocation29_spill] sm:$0xff]  ;;  %v2893_v62 = vld [vmem:[#allocation26_spill] sm:$0xff]  ;;  %v2895_v18 = vld [vmem:[#allocation27_spill] sm:$0xff] }
  0x59   :  { %v179_v57 = vadd.f32 %v175_v25, %v169_v49  ;;  %v195_v3 = vmul.f32 %v2144_v26, %v2017_v56  ;;  %v373_v33 = vadd.f32 %v369_v32, %v363_v6  ;;  %v196_v59 = vmul.f32 %v2144_v26, %v2891_v47 }
  0x5a   :  { %v1745_v60 = vpack.c.bf16 %v976_v11, %v975_v46  ;;  %v180_v63 = vadd.f32 %v176_v36, %v170_v39  ;;  %v205_v35 = vmul.f32 %v2892_v34, %v2023_v61  ;;  %v206_v15 = vmul.f32 %v2892_v34, %v2893_v62  ;;  %v2896_v11 = vld [vmem:[#allocation31_spill] sm:$0xff]  ;;  %v2897_v36 = vld [vmem:[#allocation28_spill] sm:$0xff] }
  0x5b   :  { %v189_v37 = vadd.f32 %v185_v40, %v179_v57  ;;  %v215_v28 = vmul.f32 %v2894_v22, %v2032_v14  ;;  %v383_v54 = vadd.f32 %v379_v48, %v373_v33  ;;  %v216_v6 = vmul.f32 %v2894_v22, %v2895_v18 }
  0x5c   :  { %1746 = vmatprep.subr.bf16.mxu1 %v1745_v60  ;;  %v190_v1 = vadd.f32 %v186_v52, %v180_v63  ;;  %v225_v39 = vmul.f32 %v2896_v11, %v2038_v24  ;;  %v334_v26 = vmul.f32 %v2064_v53, %v1957_v8  ;;  %v340_v32 = vmul.f32 %v2067_v58, %v1970_v19 }
  0x5d   :  { %1748 = vmatpush3.bf16.msra.mxu1 %v1745_v60  ;;  %v199_v40 = vadd.f32 %v195_v3, %v189_v37  ;;  %v350_v49 = vmul.f32 %v2078_v7, %v2006_v50  ;;  %v393_v25 = vadd.f32 %v389_v41, %v383_v54  ;;  %v226_v46 = vmul.f32 %v2896_v11, %v2897_v36  ;;  %v2898_v41 = vld [vmem:[#allocation32_spill] sm:$0xff] }
  0x5e   :  { %v200_v48 = vadd.f32 %v196_v59, %v190_v1  ;;  %v360_v57 = vmul.f32 %v2081_v12, %v2015_v55  ;;  %v344_v60 = vadd.f32 %v340_v32, %v334_v26  ;;  %v370_v3 = vmul.f32 %v2090_v27, %v2891_v47 }
  0x5f   :  { %v209_v52 = vadd.f32 %v205_v35, %v199_v40  ;;  %v380_v53 = vmul.f32 %v2093_v31, %v2893_v62  ;;  %v403_v58 = vadd.f32 %v399_v30, %v393_v25  ;;  %v390_v7 = vmul.f32 %v2102_v38, %v2895_v18 }
  0x60   :  { %v210_v33 = vadd.f32 %v206_v15, %v200_v48  ;;  %v907_v63 = vmul.f32 %v2898_v41, %v1951_v5  ;;  %v354_v59 = vadd.f32 %v350_v49, %v344_v60  ;;  %v908_v27 = vmul.f32 %v2898_v41, %v1957_v8 }
  0x61   :  { %v219_v12 = vadd.f32 %v215_v28, %v209_v52  ;;  %v913_v31 = vmul.f32 %v2208_v13, %v1959_v9  ;;  %1637 = vmatprep.mubr.msk.f32.mxu1 %vm231_vm0, %v403_v58  ;;  %v914_v30 = vmul.f32 %v2208_v13, %v1970_v19  ;;  %v923_v37 = vmul.f32 %v2217_v17, %v2000_v45 }
  0x62   :  { %v220_v38 = vadd.f32 %v216_v6, %v210_v33  ;;  %v924_v34 = vmul.f32 %v2217_v17, %v2006_v50  ;;  %v364_v15 = vadd.f32 %v360_v57, %v354_v59  ;;  %v933_v28 = vmul.f32 %v2220_v44, %v2008_v51 }
  0x63   :  { %v229_v35 = vadd.f32 %v225_v39, %v219_v12  ;;  %v917_v22 = vadd.f32 %v913_v31, %v907_v63  ;;  %v400_v13 = vmul.f32 %v2111_v42, %v2897_v36  ;;  %v918_v1 = vadd.f32 %v914_v30, %v908_v27 }
  0x64   :  { %v230_v54 = vadd.f32 %v226_v46, %v220_v38  ;;  %v934_v6 = vmul.f32 %v2220_v44, %v2015_v55  ;;  %v374_v17 = vadd.f32 %v370_v3, %v364_v15  ;;  %v943_v39 = vmul.f32 %v2223_v0, %v2017_v56 }
  0x65   :  { %v927_v11 = vadd.f32 %v923_v37, %v917_v22  ;;  %v944_v40 = vmul.f32 %v2223_v0, %v2891_v47  ;;  %v928_v42 = vadd.f32 %v924_v34, %v918_v1  ;;  %v953_v32 = vmul.f32 %v2238_v43, %v2023_v61 }
  0x66   :  { %v1725_v26 = vpack.c.bf16 %v230_v54, %v229_v35  ;;  %v954_v44 = vmul.f32 %v2238_v43, %v2893_v62  ;;  %v384_v49 = vadd.f32 %v380_v53, %v374_v17  ;;  %v963_v0 = vmul.f32 %v2241_v16, %v2032_v14  ;;  %v2899_v53 = vld [vmem:[#allocation11_spill] sm:$0xff] }
  0x67   :  { %v937_v25 = vadd.f32 %v933_v28, %v927_v11  ;;  %v964_v48 = vmul.f32 %v2241_v16, %v2895_v18  ;;  %v938_v46 = vadd.f32 %v934_v6, %v928_v42  ;;  %v973_v43 = vmul.f32 %v2252_v20, %v2038_v24 }
  0x68   :  { %1726 = vmatprep.subr.bf16.mxu0 %v1725_v26  ;;  %v2375_v57 = vstv %s2325_s11  ;;  %v2378_v52 = vstv %s2327_s12  ;;  %v394_v60 = vadd.f32 %v390_v7, %v384_v49  ;;  %v2389_v41 = vstv %s2333_s1  ;;  %s2706_s11 = sld [smem:[#allocation2 + $0x205]]  ;;  %s2718_s12 = sld [smem:[#allocation2 + $0x206]] }
  0x69   :  { %v947_v3 = vadd.f32 %v943_v39, %v937_v25  ;;  %1728 = vmatpush3.bf16.msra.mxu0 %v1725_v26  ;;  %v46_v16 = vmul.f32 %v2375_v57, %v2899_v53  ;;  %v57_v58 = vmul.f32 %v2378_v52, %v1939_v2  ;;  %v948_v33 = vadd.f32 %v944_v40, %v938_v46  ;;  %v2901_v46 = vld [vmem:[#allocation12_spill] sm:$0xff]  ;;  %s2739_s1 = sld [smem:[#allocation2 + $0x207]] }
  0x6a   :  { %v2392_v63 = vstv %s2342_s13  ;;  %v2395_v12 = vstv %s2344_s14  ;;  %v404_v7 = vadd.f32 %v400_v13, %v394_v60  ;;  %v72_v31 = vmul.f32 %v2389_v41, %v1945_v4 }
  0x6b   :  { %v957_v59 = vadd.f32 %v953_v32, %v947_v3  ;;  %v61_v27 = vadd.f32 %v57_v58, %v46_v16  ;;  %v958_v38 = vadd.f32 %v954_v44, %v948_v33  ;;  %v974_v30 = vmul.f32 %v2252_v20, %v2897_v36  ;;  %v2900_v44 = vld [vmem:[#allocation21_spill] sm:$0xff] }
  0x6c   :  { %v87_v37 = vmul.f32 %v2392_v63, %v1961_v10  ;;  %v2408_v34 = vstv %s2352_s15  ;;  %1638 = vmatmul.mubr.msk.f32.gmra.mrb[2].mxu1 %vm231_vm0, %v404_v7  ;;  %v102_v22 = vmul.f32 %v2395_v12, %v1973_v21  ;;  %v2418_v28 = vstv %s2358_s16  ;;  %v2902_v58 = vld [vmem:[#allocation13_spill] sm:$0xff]  ;;  %s1890_s15 = smov [#allocation7]  }
  0x6d   :  { %v967_v35 = vadd.f32 %v963_v0, %v957_v59  ;;  %v76_v15 = vadd.f32 %v72_v31, %v61_v27  ;;  %v968_v20 = vadd.f32 %v964_v48, %v958_v38  ;;  %v2421_v54 = vstv %s2364_s17  ;;  %v2903_v27 = vld [vmem:[#allocation14_spill] sm:$0xff]  ;;  %v2904_v38 = vld [vmem:[#allocation16_spill] sm:$0xff]  ;;  %s1449_s16 = sshll.u32 %s1890_s15, 4  ;;  %s1450_s16 = int_to_ptr.vmem [resolvable:$true] %s1449_s16 }
  0x6e   :  { %v2424_v13 = vstv %s2366_s18  ;;  %v117_v17 = vmul.f32 %v2408_v34, %v1977_v23  ;;  %v132_v40 = vmul.f32 %v2418_v28, %v1984_v29  ;;  %v2435_v26 = vstv %s2380_s19  ;;  %s1855_s17 = scalar_lea.vmem %s1450_s16, 16  ;;  %s1859_s18 = scalar_lea.vmem %s1450_s16, 32 }
  0x6f   :  { %v977_v1 = vadd.f32 %v973_v43, %v967_v35  ;;  %v91_v6 = vadd.f32 %v87_v37, %v76_v15  ;;  %v829_v11 = vmul.f32 %v2424_v13, %v2899_v53  ;;  %v978_v39 = vadd.f32 %v974_v30, %v968_v20  ;;  %p1856_p11 = scmp.ne.s32.totalorder %s1450_s16, %s1855_s17  ;;  %p1860_p12 = scmp.lt.s32.totalorder %s1450_s16, %s1450_s16 }
  0x70   :  { %v2438_v42 = vstv %s2382_s20  ;;  %v147_v49 = vmul.f32 %v2421_v54, %v2900_v44  ;;  %v835_v25 = vmul.f32 %v2435_v26, %v1939_v2  ;;  %v2450_v43 = vmul.f32 %v2424_v13, %v2901_v46  ;;  %p1861_p13 = scmp.lt.s32.totalorder %s1859_s18, %s1855_s17 }
  0x71   :  { %v106_v32 = vadd.f32 %v102_v22, %v91_v6  ;;  %v845_v0 = vmul.f32 %v2438_v42, %v1945_v4  ;;  %v1749_v48 = vpack.c.bf16 %v978_v39, %v977_v1  ;;  %v2453_v60 = vstv %s2397_s21  ;;  %v2907_v1 = vld [vmem:[#allocation18_spill] sm:$0xff] }
  0x72   :  { %v2456_v3 = vstv %s2399_s22  ;;  %v2464_v33 = vmul.f32 %v2435_v26, %v2902_v58  ;;  %v839_v7 = vadd.f32 %v835_v25, %v829_v11  ;;  %v855_v59 = vmul.f32 %v2453_v60, %v1961_v10  ;;  %v2908_v11 = vld [vmem:[#allocation19_spill] sm:$0xff]  ;;  %p1862_p0 = por %p1861_p13, %p1860_p12 }
  0x73   :  { %v121_v16 = vadd.f32 %v117_v17, %v106_v32  ;;  %1750 = vmatprep.subr.bf16.mxu1 %v1749_v48  ;;  %v2470_v31 = vmul.f32 %v2438_v42, %v2903_v27  ;;  %v2474_v30 = vmul.f32 %v2453_v60, %v2904_v38  ;;  %v2477_v37 = vstv %s2410_s23 }
  0x74   :  { %2905 = vst [vmem:[#allocation29_spill] sm:$0xff] %v2477_v37  ;;  %v2480_v35 = vstv %s2412_s24  ;;  %1752 = vmatpush3.bf16.msra.mxu1 %v1749_v48  ;;  %v849_v22 = vadd.f32 %v845_v0, %v839_v7  ;;  %v865_v20 = vmul.f32 %v2456_v3, %v1973_v21  ;;  %v2486_v6 = vmul.f32 %v2456_v3, %v2907_v1  ;;  %p1863_p1 = pnand %p1862_p0, %p1856_p11 }
  0x75   :  { %2906 = vst [vmem:[#allocation30_spill] sm:$0xff] %v2480_v35  ;;  %v136_v15 = vadd.f32 %v132_v40, %v121_v16  ;;  %v875_v17 = vmul.f32 %v2477_v37, %v1977_v23  ;;  %v2496_v39 = vmul.f32 %v2477_v37, %v2908_v11  ;;  %v2499_v40 = vstv %s2426_s25  ;;  %v2909_v16 = vld [vmem:[#allocation20_spill] sm:$0xff] }
  0x76   :  { %v47_v32 = vmul.f32 %v2375_v57, %v2901_v46  ;;  %v859_v0 = vadd.f32 %v855_v59, %v849_v22  ;;  %v885_v48 = vmul.f32 %v2480_v35, %v1984_v29  ;;  %v2507_v7 = vmul.f32 %v2480_v35, %v2909_v16 }
  0x77   :  { %v151_v25 = vadd.f32 %v147_v49, %v136_v15  ;;  %v895_v36 = vmul.f32 %v2499_v40, %v2900_v44  ;;  %v58_v18 = vmul.f32 %v2378_v52, %v2902_v58  ;;  %v73_v49 = vmul.f32 %v2389_v41, %v2903_v27 }
  0x78   :  { %2910 = vst [vmem:[#allocation31_spill] sm:$0xff] %v2507_v7  ;;  %v88_v59 = vmul.f32 %v2392_v63, %v2904_v38  ;;  %v869_v15 = vadd.f32 %v865_v20, %v859_v0  ;;  %v103_v22 = vmul.f32 %v2395_v12, %v2907_v1  ;;  %v118_v62 = vmul.f32 %v2408_v34, %v2908_v11 }
  0x79   :  { %1620 = vmatprep.mubr.msk.f32.mxu0 %vm231_vm0, %v151_v25  ;;  %v133_v47 = vmul.f32 %v2418_v28, %v2909_v16  ;;  %v62_v55 = vadd.f32 %v58_v18, %v47_v32  ;;  %v2529_v35 = vstv %s2446_s26  ;;  %v2532_v50 = vstv %s2458_s27 }
  0x7a   :  { %2911 = vst [vmem:[#allocation32_spill] sm:$0xff] %v2529_v35  ;;  %v2535_v19 = vstv %s2460_s28  ;;  %v879_v20 = vadd.f32 %v875_v17, %v869_v15  ;;  %v656_v25 = vmul.f32 %v2529_v35, %v2899_v53  ;;  %v657_v0 = vmul.f32 %v2529_v35, %v2901_v46 }
  0x7b   :  { %v662_v7 = vmul.f32 %v2532_v50, %v1939_v2  ;;  %v77_v18 = vadd.f32 %v73_v49, %v62_v55  ;;  %v663_v32 = vmul.f32 %v2532_v50, %v2902_v58  ;;  %v672_v8 = vmul.f32 %v2535_v19, %v1945_v4 }
  0x7c   :  { %v673_v17 = vmul.f32 %v2535_v19, %v2903_v27  ;;  %v889_v15 = vadd.f32 %v885_v48, %v879_v20  ;;  %v2552_v37 = vstv %s2488_s29  ;;  %v2555_v46 = vstv %s2490_s30 }
  0x7d   :  { %v666_v53 = vadd.f32 %v662_v7, %v656_v25  ;;  %v92_v35 = vadd.f32 %v88_v59, %v77_v18  ;;  %v667_v2 = vadd.f32 %v663_v32, %v657_v0  ;;  %v682_v55 = vmul.f32 %v2552_v37, %v1961_v10  ;;  %v2912_v10 = vld [vmem:[#allocation22_spill] sm:$0xff] }
  0x7e   :  { %v683_v58 = vmul.f32 %v2552_v37, %v2904_v38  ;;  %v899_v4 = vadd.f32 %v895_v36, %v889_v15  ;;  %v692_v27 = vmul.f32 %v2555_v46, %v1973_v21  ;;  %v693_v48 = vmul.f32 %v2555_v46, %v2907_v1 }
  0x7f   :  { %v676_v49 = vadd.f32 %v672_v8, %v666_v53  ;;  %v107_v7 = vadd.f32 %v103_v22, %v92_v35  ;;  %v677_v20 = vadd.f32 %v673_v17, %v667_v2  ;;  %v2566_v25 = vstv %s2517_s4 }
  0x80   :  { %v2569_v59 = vstv %s2519_s0  ;;  %1662 = vmatprep.mubr.msk.f32.mxu1 %vm231_vm0, %v899_v4  ;;  %v148_v38 = vmul.f32 %v2421_v54, %v2912_v10  ;;  %v702_v8 = vmul.f32 %v2566_v25, %v1977_v23  ;;  %v703_v21 = vmul.f32 %v2566_v25, %v2908_v11 }
  0x81   :  { %v686_v36 = vadd.f32 %v682_v55, %v676_v49  ;;  %v122_v0 = vadd.f32 %v118_v62, %v107_v7  ;;  %v687_v1 = vadd.f32 %v683_v58, %v677_v20  ;;  %v712_v35 = vmul.f32 %v2569_v59, %v1984_v29 }
  0x82   :  { %v2581_v22 = vstv %s2537_s5  ;;  %v713_v32 = vmul.f32 %v2569_v59, %v2909_v16  ;;  %v840_v23 = vadd.f32 %v2464_v33, %v2450_v43  ;;  %v48_v62 = vmul.f32 %v2375_v57, %v1951_v5 }
  0x83   :  { %v696_v18 = vadd.f32 %v692_v27, %v686_v36  ;;  %v722_v17 = vmul.f32 %v2581_v22, %v2900_v44  ;;  %v137_v15 = vadd.f32 %v133_v47, %v122_v0  ;;  %v697_v53 = vadd.f32 %v693_v48, %v687_v1 }
  0x84   :  { %v59_v29 = vmul.f32 %v2378_v52, %v1959_v9  ;;  %v723_v2 = vmul.f32 %v2581_v22, %v2912_v10  ;;  %v850_v16 = vadd.f32 %v2470_v31, %v840_v23  ;;  %v74_v44 = vmul.f32 %v2389_v41, %v2000_v45 }
  0x85   :  { %v706_v11 = vadd.f32 %v702_v8, %v696_v18  ;;  %v152_v55 = vadd.f32 %v148_v38, %v137_v15  ;;  %v707_v58 = vadd.f32 %v703_v21, %v697_v53  ;;  %v89_v47 = vmul.f32 %v2392_v63, %v2008_v51  ;;  %v2914_v15 = vld [vmem:[#allocation15_spill] sm:$0xff] }
  0x86   :  { %v63_v43 = vadd.f32 %v59_v29, %v48_v62  ;;  %v896_v33 = vmul.f32 %v2499_v40, %v2912_v10  ;;  %v860_v49 = vadd.f32 %v2474_v30, %v850_v16  ;;  %v104_v27 = vmul.f32 %v2395_v12, %v2017_v56  ;;  %v2915_v62 = vld [vmem:[#allocation31_spill] sm:$0xff] }
  0x87   :  { %v716_v4 = vadd.f32 %v712_v35, %v706_v11  ;;  %1621 = vmatmul.mubr.msk.f32.vlgmr.msra.gmra.mrb[0].mxu0 %vm231_vm0, %v152_v55  ;;  %v717_v31 = vadd.f32 %v713_v32, %v707_v58  ;;  %v119_v7 = vmul.f32 %v2408_v34, %v2023_v61  ;;  %v831_v20 = vmul.f32 %v2424_v13, %v1951_v5  ;;  %v2917_v16 = vld [vmem:[#allocation23_spill] sm:$0xff]  ;;  %v2918_v58 = vld [vmem:[#allocation30_spill] sm:$0xff] }
  0x88   :  { %v78_v48 = vadd.f32 %v74_v44, %v63_v43  ;;  %v870_v36 = vadd.f32 %v2486_v6, %v860_v49  ;;  %v837_v10 = vmul.f32 %v2435_v26, %v1959_v9  ;;  %v847_v30 = vmul.f32 %v2438_v42, %v2000_v45 }
  0x89   :  { %v726_v38 = vadd.f32 %v722_v17, %v716_v4  ;;  %v727_v8 = vadd.f32 %v723_v2, %v717_v31  ;;  %v134_v0 = vmul.f32 %v2418_v28, %v2032_v14  ;;  %v149_v1 = vmul.f32 %v2421_v54, %v2038_v24  ;;  %v2913_v17 = vld [vmem:[#allocation29_spill] sm:$0xff]  ;;  %v2919_v4 = vld [vmem:[#allocation24_spill] sm:$0xff] }
  0x8a   :  { %v93_v21 = vadd.f32 %v89_v47, %v78_v48  ;;  %v880_v35 = vadd.f32 %v2496_v39, %v870_v36  ;;  %v841_v5 = vadd.f32 %v837_v10, %v831_v20  ;;  %v857_v6 = vmul.f32 %v2453_v60, %v2008_v51  ;;  %v2916_v2 = vld [vmem:[#allocation17_spill] sm:$0xff]  ;;  %v2922_v36 = vld [vmem:[#allocation32_spill] sm:$0xff] }
  0x8b   :  { %v867_v9 = vmul.f32 %v2456_v3, %v2017_v56  ;;  %v1737_v18 = vpack.c.bf16 %v727_v8, %v726_v38  ;;  %v877_v23 = vmul.f32 %v2913_v17, %v2023_v61  ;;  %v49_v53 = vmul.f32 %v2375_v57, %v2914_v15  ;;  %v2920_v48 = vld [vmem:[#allocation25_spill] sm:$0xff] }
  0x8c   :  { %v108_v32 = vadd.f32 %v104_v27, %v93_v21  ;;  %v890_v29 = vadd.f32 %v2915_v62, %v880_v35  ;;  %v851_v11 = vadd.f32 %v847_v30, %v841_v5  ;;  %v60_v39 = vmul.f32 %v2378_v52, %v2916_v2  ;;  %v2643_v38 = vld [vmem:[#allocation6 + $0x10] sm:$0xff]  ;;  %v2647_v30 = vld [vmem:[#allocation6 + $0x18] sm:$0xff]  ;;  %v2923_v62 = vld [vmem:[#allocation27_spill] sm:$0xff] }
  0x8d   :  { %v75_v44 = vmul.f32 %v2389_v41, %v2917_v16  ;;  %1738 = vmatprep.subr.bf16.mxu0 %v1737_v18  ;;  %v887_v43 = vmul.f32 %v2918_v58, %v2032_v14  ;;  %v897_v47 = vmul.f32 %v2499_v40, %v2038_v24  ;;  %v90_v57 = vmul.f32 %v2392_v63, %v2919_v4  ;;  %v2921_v41 = vld [vmem:[#allocation26_spill] sm:$0xff]  ;;  %v2652_v21 = vld [vmem:[#allocation6 + $0x30] sm:$0xff] }
  0x8e   :  { %v123_v55 = vadd.f32 %v119_v7, %v108_v32  ;;  %v900_v49 = vadd.f32 %v896_v33, %v890_v29  ;;  %1740 = vmatpush3.bf16.msra.mxu0 %v1737_v18  ;;  %v861_v27 = vadd.f32 %v857_v6, %v851_v11  ;;  %v64_v31 = vadd.f32 %v60_v39, %v49_v53  ;;  %v2924_v2 = vld [vmem:[#allocation28_spill] sm:$0xff] }
  0x8f   :  { %v105_v52 = vmul.f32 %v2395_v12, %v2920_v48  ;;  %v120_v7 = vmul.f32 %v2408_v34, %v2921_v41  ;;  %v658_v10 = vmul.f32 %v2643_v38, %v2922_v36  ;;  %v659_v63 = vmul.f32 %v2647_v30, %v2922_v36  ;;  %v2656_v34 = vld [vmem:[#allocation6 + $0x38] sm:$0xff] }
  0x90   :  { %v138_v20 = vadd.f32 %v134_v0, %v123_v55  ;;  %1663 = vmatmul.mubr.msk.f32.vlgmr.msra.gmra.mrb[4].mxu1 %vm231_vm0, %v900_v49  ;;  %v871_v33 = vadd.f32 %v867_v9, %v861_v27  ;;  %v79_v8 = vadd.f32 %v75_v44, %v64_v31  ;;  %v664_v12 = vmul.f32 %v2652_v21, %v2532_v50  ;;  %v2714_v27 = vld [vmem:[#allocation6 + $0x98] sm:$0xff] }
  0x91   :  { %v665_v0 = vmul.f32 %v2656_v34, %v2532_v50  ;;  %v674_v5 = vmul.f32 %v2535_v19, %v2000_v45  ;;  %v675_v6 = vmul.f32 %v2535_v19, %v2917_v16  ;;  %v684_v9 = vmul.f32 %v2552_v37, %v2008_v51 }
  0x92   :  { %v153_v35 = vadd.f32 %v149_v1, %v138_v20  ;;  %v881_v18 = vadd.f32 %v877_v23, %v871_v33  ;;  %v94_v32 = vadd.f32 %v90_v57, %v79_v8  ;;  %v668_v15 = vadd.f32 %v664_v12, %v658_v10  ;;  %v2720_v20 = vld [vmem:[#allocation6 + $0xb8] sm:$0xff]  ;;  %v1800_v8 = vld [vmem:[#allocation6] sm:$0xff] }
  0x93   :  { %v669_v53 = vadd.f32 %v665_v0, %v659_v63  ;;  %v135_v50 = vmul.f32 %v2418_v28, %v2923_v62  ;;  %v685_v45 = vmul.f32 %v2552_v37, %v2919_v4  ;;  %v694_v19 = vmul.f32 %v2555_v46, %v2017_v56  ;;  %v2697_v4 = vld [vmem:[#allocation6 + $0x58] sm:$0xff] }
  0x94   :  { %1623 = vmatprep.mubr.msk.f32.mxu0 %vm231_vm0, %v153_v35  ;;  %v695_v51 = vmul.f32 %v2555_v46, %v2920_v48  ;;  %v891_v1 = vadd.f32 %v887_v43, %v881_v18  ;;  %v109_v23 = vadd.f32 %v105_v52, %v94_v32  ;;  %v678_v29 = vadd.f32 %v674_v5, %v668_v15  ;;  %v2734_v63 = vld [vmem:[#allocation6 + $0xd8] sm:$0xff]  ;;  %v1801_v35 = vld [vmem:[#allocation6 + $0x20] sm:$0xff] }
  0x95   :  { %v679_v11 = vadd.f32 %v675_v6, %v669_v53  ;;  %v150_v28 = vmul.f32 %v2421_v54, %v2924_v2  ;;  %v704_v37 = vmul.f32 %v2566_v25, %v2023_v61  ;;  %v705_v56 = vmul.f32 %v2566_v25, %v2921_v41  ;;  %v1802_v6 = vld [vmem:[#allocation6 + $0x40] sm:$0xff] }
  0x96   :  { %v714_v46 = vmul.f32 %v2569_v59, %v2032_v14  ;;  %v901_v39 = vadd.f32 %v897_v47, %v891_v1  ;;  %v124_v16 = vadd.f32 %v120_v7, %v109_v23  ;;  %v688_v44 = vadd.f32 %v684_v9, %v678_v29  ;;  %v1806_v23 = vld [vmem:[#allocation6 + $0x48] sm:$0xff] }
  0x97   :  { %v689_v55 = vadd.f32 %v685_v45, %v679_v11  ;;  %v715_v43 = vmul.f32 %v2569_v59, %v2923_v62  ;;  %v832_v54 = vmul.f32 %v2647_v30, %v2424_v13  ;;  %v838_v61 = vmul.f32 %v2656_v34, %v2435_v26 }
  0x98   :  { %v848_v14 = vmul.f32 %v2697_v4, %v2438_v42  ;;  %1665 = vmatprep.mubr.msk.f32.mxu1 %vm231_vm0, %v901_v39  ;;  %v139_v25 = vadd.f32 %v135_v50, %v124_v16  ;;  %v698_v47 = vadd.f32 %v694_v19, %v688_v44  ;;  %v724_v49 = vmul.f32 %v2581_v22, %v2038_v24  ;;  %v2710_v42 = vld [vmem:[#allocation6 + $0x78] sm:$0xff]  ;;  %v1804_v50 = vld [vmem:[#allocation6 + $0x28] sm:$0xff]  ;;  %v1805_v19 = vld [vmem:[#allocation6 + $0x60] sm:$0xff] }
  0x99   :  { %v699_v57 = vadd.f32 %v695_v51, %v689_v55  ;;  %v725_v13 = vmul.f32 %v2581_v22, %v2924_v2  ;;  %v842_v26 = vadd.f32 %v838_v61, %v832_v54  ;;  %v858_v59 = vmul.f32 %v2710_v42, %v2453_v60  ;;  %v1808_v16 = vld [vmem:[#allocation6 + $0x68] sm:$0xff] }
  0x9a   :  { %v868_v24 = vmul.f32 %v2714_v27, %v2456_v3  ;;  %v154_v31 = vadd.f32 %v150_v28, %v139_v25  ;;  %v708_v48 = vadd.f32 %v704_v37, %v698_v47  ;;  %v878_v22 = vmul.f32 %v2720_v20, %v2913_v17  ;;  %v1809_v55 = vld [vmem:[#allocation6 + $0x88] sm:$0xff] }
  0x9b   :  { %v709_v52 = vadd.f32 %v705_v56, %v699_v57  ;;  %v852_v41 = vadd.f32 %v848_v14, %v842_v26  ;;  %v2725_v7 = vstv %s2666_s6  ;;  %v2728_v36 = vstv %s2677_s7  ;;  %v1807_v56 = vld [vmem:[#allocation6 + $0x80] sm:$0xff] }
  0x9c   :  { %v2731_v60 = vstv %s2679_s8  ;;  %1624 = vmatmul.mubr.msk.f32.gmra.mrb[2].mxu0 %vm231_vm0, %v154_v31  ;;  %v718_v3 = vadd.f32 %v714_v46, %v708_v48  ;;  %v888_v33 = vmul.f32 %v2734_v63, %v2918_v58  ;;  %v580_v17 = vmul.f32 %v1800_v8, %v2725_v7  ;;  %v1803_v58 = vld [vmem:[#allocation6 + $0x8] sm:$0xff]  ;;  %v1810_v14 = vld [vmem:[#allocation6 + $0xa0] sm:$0xff] }
  0x9d   :  { %v719_v10 = vadd.f32 %v715_v43, %v709_v52  ;;  %v862_v12 = vadd.f32 %v858_v59, %v852_v41  ;;  %v898_v0 = vmul.f32 %v2499_v40, %v2924_v2  ;;  %v586_v5 = vmul.f32 %v1801_v35, %v2728_v36  ;;  %v1811_v57 = vld [vmem:[#allocation6 + $0xc0] sm:$0xff]  ;;  %v1812_v52 = vld [vmem:[#allocation6 + $0x50] sm:$0xff]  ;;  %v1813_v41 = vld [vmem:[#allocation6 + $0xa8] sm:$0xff] }
  0x9e   :  { %v596_v9 = vmul.f32 %v1802_v6, %v2731_v60  ;;  %v728_v18 = vadd.f32 %v724_v49, %v718_v3  ;;  %v581_v15 = vmul.f32 %v1803_v58, %v2725_v7  ;;  %v605_v53 = vstv %s2689_s9 }
  0x9f   :  { %v729_v32 = vadd.f32 %v725_v13, %v719_v10  ;;  %v872_v62 = vadd.f32 %v868_v24, %v862_v12  ;;  %v587_v45 = vmul.f32 %v1804_v50, %v2728_v36  ;;  %v590_v40 = vadd.f32 %v586_v5, %v580_v17  ;;  %v1815_v12 = vld [vmem:[#allocation6 + $0xe0] sm:$0xff]  ;;  %v1816_v5 = vld [vmem:[#allocation6 + $0x90] sm:$0xff] }
  0xa0   :  { %v606_v51 = vmul.f32 %v1805_v19, %v605_v53  ;;  %v597_v29 = vmul.f32 %v1806_v23, %v2731_v60  ;;  %v615_v11 = vstv %s2704_s10  ;;  %v2751_v2 = vstv %s2706_s11 }
  0xa1   :  { %v1741_v1 = vpack.c.bf16 %v729_v32, %v728_v18  ;;  %v882_v28 = vadd.f32 %v878_v22, %v872_v62  ;;  %v600_v37 = vadd.f32 %v596_v9, %v590_v40  ;;  %v616_v46 = vmul.f32 %v1807_v56, %v615_v11  ;;  %v1817_v32 = vld [vmem:[#allocation6 + $0xc8] sm:$0xff]  ;;  %v1821_v56 = vld [vmem:[#allocation6 + $0xf0] sm:$0xff] }
  0xa2   :  { %v2754_v39 = vstv %s2718_s12  ;;  %v607_v44 = vmul.f32 %v1808_v16, %v605_v53  ;;  %v617_v43 = vmul.f32 %v1809_v55, %v615_v11  ;;  %v626_v25 = vmul.f32 %v1810_v14, %v2751_v2 }
  0xa3   :  { %1742 = vmatprep.subr.bf16.mxu0 %v1741_v1  ;;  %v892_v54 = vadd.f32 %v888_v33, %v882_v28  ;;  %v610_v61 = vadd.f32 %v606_v51, %v600_v37  ;;  %v591_v47 = vadd.f32 %v587_v45, %v581_v15  ;;  %v636_v49 = vmul.f32 %v1811_v57, %v2754_v39  ;;  %v1814_v33 = vld [vmem:[#allocation6 + $0x70] sm:$0xff] }
  0xa4   :  { %1744 = vmatpush3.bf16.msra.mxu0 %v1741_v1  ;;  %v645_v13 = vstv %s2739_s1  ;;  %v582_v26 = vmul.f32 %v2643_v38, %v2725_v7  ;;  %v588_v59 = vmul.f32 %v2652_v21, %v2728_v36  ;;  %v598_v22 = vmul.f32 %v1812_v52, %v2731_v60  ;;  %v1818_v45 = vld [vmem:[#allocation6 + $0xb0] sm:$0xff]  ;;  %v1819_v1 = vld [vmem:[#allocation6 + $0xe8] sm:$0xff] }
  0xa5   :  { %v902_v24 = vadd.f32 %v898_v0, %v892_v54  ;;  %v620_v31 = vadd.f32 %v616_v46, %v610_v61  ;;  %v601_v48 = vadd.f32 %v597_v29, %v591_v47  ;;  %v627_v3 = vmul.f32 %v1813_v41, %v2751_v2 }
  0xa6   :  { %v592_v10 = vadd.f32 %v588_v59, %v582_v26  ;;  %v608_v8 = vmul.f32 %v1814_v33, %v605_v53  ;;  %v646_v38 = vmul.f32 %v1815_v12, %v645_v13  ;;  %v618_v21 = vmul.f32 %v1816_v5, %v615_v11 }
  0xa7   :  { %1666 = vmatmul.mubr.msk.f32.gmra.mrb[6].mxu1 %vm231_vm0, %v902_v24  ;;  %v630_v17 = vadd.f32 %v626_v25, %v620_v31  ;;  %v611_v35 = vadd.f32 %v607_v44, %v601_v48  ;;  %v583_v6 = vmul.f32 %v2647_v30, %v2725_v7  ;;  %v589_v9 = vmul.f32 %v2656_v34, %v2728_v36  ;;  %v1820_v36 = vld [vmem:[#allocation6 + $0xd0] sm:$0xff] }
  0xa8   :  { %v602_v0 = vadd.f32 %v598_v22, %v592_v10  ;;  %v599_v18 = vmul.f32 %v2697_v4, %v2731_v60  ;;  %v637_v58 = vmul.f32 %v1817_v32, %v2754_v39  ;;  %v628_v40 = vmul.f32 %v1818_v45, %v2751_v2 }
  0xa9   :  { %v640_v15 = vadd.f32 %v636_v49, %v630_v17  ;;  %v621_v62 = vadd.f32 %v617_v43, %v611_v35  ;;  %v593_v19 = vadd.f32 %v589_v9, %v583_v6  ;;  %v609_v51 = vmul.f32 %v2710_v42, %v605_v53 }
  0xaa   :  { %v612_v50 = vadd.f32 %v608_v8, %v602_v0  ;;  %v647_v30 = vmul.f32 %v1819_v1, %v645_v13  ;;  %v638_v4 = vmul.f32 %v1820_v36, %v2754_v39  ;;  %v619_v29 = vmul.f32 %v2714_v27, %v615_v11  ;;  %v1822_v11 = vld [vmem:[#allocation6 + $0xf8] sm:$0xff] }
  0xab   :  { %v650_v7 = vadd.f32 %v646_v38, %v640_v15  ;;  %v631_v23 = vadd.f32 %v627_v3, %v621_v62  ;;  %v603_v60 = vadd.f32 %v599_v18, %v593_v19  ;;  %v648_v46 = vmul.f32 %v1821_v56, %v645_v13 }
  0xac   :  { %v622_v34 = vadd.f32 %v618_v21, %v612_v50  ;;  %v629_v42 = vmul.f32 %v2720_v20, %v2751_v2  ;;  %v639_v43 = vmul.f32 %v2734_v63, %v2754_v39  ;;  %v649_v61 = vmul.f32 %v1822_v11, %v645_v13 }
  0xad   :  { %1648 = vmatprep.mubr.msk.f32.mxu0 %vm231_vm0, %v650_v7  ;;  %v641_v28 = vadd.f32 %v637_v58, %v631_v23  ;;  %v613_v16 = vadd.f32 %v609_v51, %v603_v60  ;;  %v1887_v32 = vmov 0.0|0.0   ;;  %v1889_v58 = vmov 0.0   ;;  %v1367_v51 = vld [vmem:[%s2815_s2] sm:$0x1] }
  0xae   :  { %v632_v37 = vadd.f32 %v628_v40, %v622_v34  ;;  %vm1441_vm2 = vcmask 253952  }
  0xaf   :  { %v651_v53 = vadd.f32 %v647_v30, %v641_v28  ;;  %v623_v55 = vadd.f32 %v619_v29, %v613_v16 }
  0xb0   :  { %v642_v44 = vadd.f32 %v638_v4, %v632_v37 }
  0xb1   :  { %1649 = vmatmul.mubr.msk.f32.vlgmr.msra.gmra.mrb[4].mxu0 %vm231_vm0, %v651_v53  ;;  %v633_v27 = vadd.f32 %v629_v42, %v623_v55 }
  0xb2   :  { %v652_v54 = vadd.f32 %v648_v46, %v642_v44 }
  0xb3   :  { %v643_v14 = vadd.f32 %v639_v43, %v633_v27 }
  0xb4   :  { %1651 = vmatprep.mubr.msk.f32.mxu0 %vm231_vm0, %v652_v54 }
  0xb5   :  { %v653_v25 = vadd.f32 %v649_v61, %v643_v14 }
  0xb7   :  { %1652 = vmatmul.mubr.msk.f32.gmra.mrb[6].mxu0 %vm231_vm0, %v653_v25 }
 0x128   :  { %v1636_v47 = vpop.f32.mrb[0].mxu1 }
 0x129   :  { %v559_v20 = vpop.f32.mrb[1].mxu1 }
 0x12a   :  { %v1753_v2 = vpack.c.bf16 %v1636_v47, %v559_v20 }
 0x12c   :  { %1754 = vmatprep.subr.bf16.mxu0 %v1753_v2 }
 0x12d   :  { %1756 = vmatpush3.bf16.msra.mxu0 %v1753_v2 }
 0x13f   :  { %v1639_v57 = vpop.f32.mrb[2].mxu1 }
 0x140   :  { %v569_v49 = vpop.f32.mrb[3].mxu1 }
 0x141   :  { %v1757_v63 = vpack.c.bf16 %v1639_v57, %v569_v49 }
 0x143   :  { %1758 = vmatprep.subr.bf16.mxu0 %v1757_v63 }
 0x144   :  { %1760 = vmatpush3.bf16.msra.mxu0 %v1757_v63 }
 0x15a   :  { %v1622_v39 = vpop.f32.mrb[0].mxu0 }
 0x15b   :  { %v310_v26 = vpop.f32.mrb[1].mxu0 }
 0x15c   :  { %1676 = vmatprep.mubr.msk.f32.mxu0 %vm231_vm0, %v310_v26 }
 0x15d   :  { %1677 = vmatmul.mubr.msk.f32.vlgmr.msra.gmra.mrb[8].mxu0 %vm231_vm0, %v1622_v39 }
 0x163   :  { %v1664_v13 = vpop.f32.mrb[4].mxu1 }
 0x164   :  { %v1057_v59 = vpop.f32.mrb[5].mxu1 }
 0x165   :  { %v1761_v24 = vpack.c.bf16 %v1664_v13, %v1057_v59 }
 0x167   :  { %1762 = vmatprep.subr.bf16.mxu1 %v1761_v24 }
 0x168   :  { %1764 = vmatpush3.bf16.msra.mxu1 %v1761_v24 }
 0x16f   :  { %v1625_v31 = vpop.f32.mrb[2].mxu0 }
 0x170   :  { %v320_v48 = vpop.f32.mrb[3].mxu0 }
 0x171   :  { %1679 = vmatprep.mubr.msk.f32.mxu0 %vm231_vm0, %v320_v48 }
 0x172   :  { %1680 = vmatmul.mubr.msk.f32.gmra.mrb[10].mxu0 %vm231_vm0, %v1625_v31 }
 0x17a   :  { %v1667_v52 = vpop.f32.mrb[6].mxu1 }
 0x17b   :  { %v1067_v22 = vpop.f32.mrb[7].mxu1 }
 0x17c   :  { %v1765_v41 = vpack.c.bf16 %v1667_v52, %v1067_v22 }
 0x17e   :  { %1766 = vmatprep.subr.bf16.mxu1 %v1765_v41 }
 0x17f   :  { %1768 = vmatpush3.bf16.msra.mxu1 %v1765_v41 }
 0x180   :  { %1777 = vmatprep.subr.bf16.mxu1 %v1887_v32 }
 0x184   :  { %v1650_v3 = vpop.f32.mrb[4].mxu0 }
 0x185   :  { %v808_v10 = vpop.f32.mrb[5].mxu0 }
 0x186   :  { %1690 = vmatprep.mubr.msk.f32.mxu1 %vm231_vm0, %v808_v10 }
 0x187   :  { %1691 = vmatmul.mubr.msk.f32.vlgmr.msra.gmra.mrb[8].mxu1 %vm231_vm0, %v1650_v3 }
 0x18a   :  { %v1653_v33 = vpop.f32.mrb[6].mxu0 }
 0x18b   :  { %v818_v8 = vpop.f32.mrb[7].mxu0 }
 0x18c   :  { %1693 = vmatprep.mubr.msk.f32.mxu1 %vm231_vm0, %v818_v8 }
 0x18d   :  { %1694 = vmatmul.mubr.msk.f32.gmra.mrb[10].mxu1 %vm231_vm0, %v1653_v33 }
 0x18e   :  { %1718 = vmatprep.mubr.msk.f32.mxu1 %vm1888_vm1, %v1889_v58 }
 0x230   :  { %v1678_v17 = vpop.f32.mrb[8].mxu0 }
 0x231   :  { %v1154_v12 = vpop.f32.mrb[9].mxu0 }
 0x232   :  { %1704 = vmatprep.mubr.msk.f32.mxu0 %vm231_vm0, %v1154_v12 }
 0x245   :  { %v1681_v38 = vpop.f32.mrb[10].mxu0 }
 0x246   :  { %v1164_v35 = vpop.f32.mrb[11].mxu0 }
 0x25a   :  { %v1692_v5 = vpop.f32.mrb[8].mxu1 }
 0x25b   :  { %v1251_v21 = vpop.f32.mrb[9].mxu1 }
 0x25c   :  { %v1769_v0 = vpack.c.bf16 %v1692_v5, %v1251_v21 }
 0x25e   :  { %1770 = vmatprep.subr.bf16.mxu0 %v1769_v0 }
 0x25f   :  { %1772 = vmatpush3.bf16.msra.mxu0 %v1769_v0 }
 0x260   :  { %v1695_v6 = vpop.f32.mrb[10].mxu1 }
 0x261   :  { %v1261_v9 = vpop.f32.mrb[11].mxu1 }
 0x262   :  { %v1773_v18 = vpack.c.bf16 %v1695_v6, %v1261_v9 }
 0x264   :  { %1774 = vmatprep.subr.bf16.mxu0 %v1773_v18 }
 0x265   :  { %1776 = vmatpush3.bf16.msra.mxu0 %v1773_v18 }
 0x268   :  { %1705 = vmatmul.mubr.msk.f32.vlgmr.msra.gmra.mrb[12].mxu0 %vm231_vm0, %v1678_v17 }
 0x269   :  { %1707 = vmatprep.mubr.msk.f32.mxu0 %vm231_vm0, %v1164_v35 }
 0x26c   :  { %1708 = vmatmul.mubr.msk.f32.gmra.mrb[14].mxu0 %vm231_vm0, %v1681_v38 }
 0x33b   :  { %v1706_v15 = vpop.f32.mrb[12].mxu0 }
 0x33c   :  { %v1348_v62 = vpop.f32.mrb[13].mxu0 }
 0x33d   :  { %v1778_v50 = vpack.c.bf16 %v1706_v15, %v1348_v62 }
 0x33f   :  { %v1709_v45 = vpop.f32.mrb[14].mxu0  ;;  %1779 = vmatpush3.bf16.msra.mxu1 %v1778_v50 }
 0x340   :  { %v1358_v40 = vpop.f32.mrb[15].mxu0  ;;  %1780 = vmatprep.subr.bf16.mxu1 %v1887_v32 }
 0x341   :  { %v1781_v19 = vpack.c.bf16 %v1709_v45, %v1358_v40 }
 0x343   :  { %1782 = vmatpush3.bf16.msra.mxu1 %v1781_v19 }
 0x346   :  { %1719 = vmatmul.mubr.msk.f32.vlgmr.msra.gmra.mrb[12].mxu1 %vm231_vm0, %v1367_v51 }
 0x419   :  { %v1437_v1 = vpop.f32.mrb[12].mxu1 }
 0x41a   :  { %v1720_v30 = vpop.f32.mrb[13].mxu1  ;;  %1442 = vst.msk [vmem:[#allocation7] sm:$0x1] %vm1441_vm2, %v1437_v1 }
 0x41b   :  { %1866 = shalt.err (!%p1863_p1)
}
 0x41c   :  { %s1867_s2 = scalar_lea.hbm %s2816_s3, 16 }
 0x41d   :  { %p1868_p2 = scmp.ne.s32.totalorder %s2816_s3, %s1867_s2  ;;  %p1871_p3 = scmp.lt.u32.totalorder %s1867_s2, %s2816_s3 }
 0x41f   :  { %p1873_p4 = pnand %p1871_p3, %p1868_p2 }
 0x421   :  { %1876 = shalt.err (!%p1873_p4)
}
 0x422   :  { %1452 = dma.vmem_to_hbm [thread:$0]  %s1450_s16, 16, %s2816_s3, [#allocation4]  }
 0x423   :  { %1881 = dma.done.wait [#allocation4], 16  }
 0x424   :  { %1882 = vsyncadd [#allocation4], 4294967280 }
 0x425   :  { %1456 = vsyncpa [#allocation3], 1 }
 0x426   :  { %1457 = vsyncpa [#allocation4], 1 }
 0x427   :  { %1458 = vsyncpa [#allocation5], 1 }

</bundles_post_ra>
